<compile_context>
chip_gen: v6e
topology: v6e:2x2x1
jax: 0.10.0
libtpu: 0.0.40
codegen_flags: <defaults>
</compile_context>

<pallas_src>
import functools

import jax
import jax.numpy as jnp
from jax.experimental import pallas as pl
from jax.experimental.pallas import tpu as pltpu

_LANES = 128
_SUBLANES = 8


def _round_up(x, m):
    return (x + m - 1) // m * m


def _vmem_capacity_bytes():
    try:
        info = pltpu.get_tpu_info()
        cap = getattr(info, "vmem_capacity_bytes", None)
        if cap:
            return int(cap)
    except Exception:
        pass
    return 64 << 20  # conservative default (v7x per-core VMEM)


def _pick_tile_e(num_edges, vmem_cap):
    # Bigger tiles on 128 MiB parts (v5e/v6e), smaller on v7x (64 MiB/TC);
    # never pad a small edge list beyond two tiles (one per megacore half).
    tile = 4096 if vmem_cap >= (96 << 20) else 2048
    need = _round_up(max((num_edges + 1) // 2, 1), 1024)
    return max(1024, min(tile, need))


def _vmem_limit_bytes(n_pad, tile_e, vmem_cap):
    est = (8 * tile_e * 4              # double-buffered edge tiles (3 in + 1 out)
           + 8 * n_pad * _LANES * 4    # accumulator blocks + in-kernel temps
           + 16 * tile_e * 4           # gather / select temporaries
           + (4 << 20))                # slack for Mosaic internals
    cap = int(vmem_cap * 0.7)          # stay well below physical VMEM (v7x!)
    return int(min(max(est, 16 << 20), cap))


def _degree_kernel(src_ref, dst_ref, w_ref, out_acc_ref, in_acc_ref, *, n_pad):
    """Pass 1: dense (n_pad, 128) partial weighted-degree accumulation."""
    @pl.when(pl.program_id(1) == 0)
    def _init():
        out_acc_ref[...] = jnp.zeros_like(out_acc_ref)
        in_acc_ref[...] = jnp.zeros_like(in_acc_ref)

    src = src_ref[...]                      # (rows, 128) int32
    dst = dst_ref[...]
    w = w_ref[...]                          # (rows, 128) f32
    rows = src.shape[0]
    # Node ids along sublanes, 128 independent edge buckets along lanes.
    node_iota = jax.lax.broadcasted_iota(jnp.int32, (n_pad, _LANES), 0)

    def accumulate(ids, acc_ref):
        acc = jnp.zeros((n_pad, _LANES), jnp.float32)
        for r in range(rows):               # static unroll; pure VPU, no relayouts
            acc = acc + jnp.where(node_iota == ids[r:r + 1, :],
                                  w[r:r + 1, :], 0.0)
        acc_ref[...] += acc[None]

    accumulate(src, out_acc_ref)
    accumulate(dst, in_acc_ref)


def _normalize_kernel(src_norm_ref, dst_norm_ref, src_ref, dst_ref, w_ref,
                      out_ref, *, n_pad):
    """Pass 2: O(E) per-edge norm gather from resident tables, then scale."""
    src = src_ref[...]                      # (rows, 128) int32
    dst = dst_ref[...]
    w = w_ref[...]                          # (rows, 128) f32
    n_chunks = n_pad // _LANES

    def gather(tbl_ref, idx):
        lane = jnp.bitwise_and(idx, _LANES - 1)     # index within a 128-node chunk
        chunk = jnp.right_shift(idx, 7)             # chunk id (sentinel -> n_chunks)
        out = jnp.zeros(idx.shape, jnp.float32)
        for c in range(n_chunks):
            tbl_c = jnp.broadcast_to(
                tbl_ref[:, c * _LANES:(c + 1) * _LANES], idx.shape)
            vals = jnp.take_along_axis(tbl_c, lane, axis=1)   # lane gather
            out = jnp.where(chunk == c, vals, out)
        return out

    out_ref[...] = gather(src_norm_ref, src) * gather(dst_norm_ref, dst) * w


def edge_weight_norm(src, dst, edge_weight, num_nodes, eps=0.0):
    """norm='both' EdgeWeightNorm. src/dst: (E,) int node ids, edge_weight: (E,) f32."""
    E = int(edge_weight.shape[0])
    n_pad = _round_up(max(int(num_nodes), 1), _LANES)       # lane-aligned node axis
    vmem_cap = _vmem_capacity_bytes()
    tile_e = _pick_tile_e(E, vmem_cap)
    e_pad = _round_up(max(E, 1), 2 * tile_e)                # two halves (megacore)
    rows_per_tile = tile_e // _LANES
    tiles_per_half = e_pad // (2 * tile_e)
    num_tiles = e_pad // tile_e
    pad = e_pad - E
    vmem = _vmem_limit_bytes(n_pad, tile_e, vmem_cap)

    # Padded edges: sentinel node id == n_pad (never matches any node and maps
    # to a nonexistent gather chunk) and zero weight -> contribute nothing.
    src_p = jnp.pad(src.astype(jnp.int32), (0, pad),
                    constant_values=n_pad).reshape(e_pad // _LANES, _LANES)
    dst_p = jnp.pad(dst.astype(jnp.int32), (0, pad),
                    constant_values=n_pad).reshape(e_pad // _LANES, _LANES)
    w_p = jnp.pad(edge_weight.astype(jnp.float32), (0, pad),
                  constant_values=0.0).reshape(e_pad // _LANES, _LANES)

    edge_spec1 = pl.BlockSpec((rows_per_tile, _LANES),
                              lambda c, t: (c * tiles_per_half + t, 0))
    acc_spec = pl.BlockSpec((1, n_pad, _LANES), lambda c, t: (c, 0, 0))

    # ---- Pass 1: per-half dense degree accumulators (fully dense blocks). ----
    out_acc, in_acc = pl.pallas_call(
        functools.partial(_degree_kernel, n_pad=n_pad),
        out_shape=(jax.ShapeDtypeStruct((2, n_pad, _LANES), jnp.float32),
                   jax.ShapeDtypeStruct((2, n_pad, _LANES), jnp.float32)),
        grid=(2, tiles_per_half),
        in_specs=[edge_spec1, edge_spec1, edge_spec1],
        out_specs=(acc_spec, acc_spec),
        compiler_params=pltpu.CompilerParams(
            dimension_semantics=("parallel", "arbitrary"),
            vmem_limit_bytes=vmem),
    )(src_p, dst_p, w_p)

    # Tiny combine + finalize (O(n_pad)): sum halves & lane buckets, guard
    # zero-degree nodes (padded / untouched, never gathered by a real edge).
    def finalize(acc):
        deg = jnp.sum(acc, axis=(0, 2)) + float(eps)        # (n_pad,)
        return jax.lax.rsqrt(jnp.where(deg > 0.0, deg, 1.0)).reshape(1, n_pad)

    src_norm = finalize(out_acc)
    dst_norm = finalize(in_acc)

    edge_spec2 = pl.BlockSpec((rows_per_tile, _LANES), lambda t: (t, 0))
    norm_spec = pl.BlockSpec((1, n_pad), lambda t: (0, 0))

    # ---- Pass 2: per-edge gather + scale (independent tiles -> parallel). ----
    out = pl.pallas_call(
        functools.partial(_normalize_kernel, n_pad=n_pad),
        out_shape=jax.ShapeDtypeStruct((e_pad // _LANES, _LANES), jnp.float32),
        grid=(num_tiles,),
        in_specs=[norm_spec, norm_spec, edge_spec2, edge_spec2, edge_spec2],
        out_specs=pl.BlockSpec((rows_per_tile, _LANES), lambda t: (t, 0)),
        compiler_params=pltpu.CompilerParams(
            dimension_semantics=("parallel",),
            vmem_limit_bytes=vmem),
    )(src_norm, dst_norm, src_p, dst_p, w_p)

    return out.reshape(e_pad)[:E]


def _reference(src, dst, w, num_nodes, eps=0.0):
    out_deg = jnp.zeros((num_nodes,), jnp.float32).at[src].add(w)
    in_deg = jnp.zeros((num_nodes,), jnp.float32).at[dst].add(w)
    src_norm = jnp.power(out_deg + eps, -0.5)
    dst_norm = jnp.power(in_deg + eps, -0.5)
    return src_norm[src] * dst_norm[dst] * w


if __name__ == "__main__":
    N = 64      # number of nodes
    E = 2000    # number of edges (non-multiple of the tile to exercise padding)

    key = jax.random.PRNGKey(0)
    k_src, k_dst, k_w = jax.random.split(key, 3)
    src = jax.random.randint(k_src, (E,), 0, N, dtype=jnp.int32)
    dst = jax.random.randint(k_dst, (E,), 0, N, dtype=jnp.int32)
    # norm='both' requires strictly positive edge weights (as in the module).
    edge_w = jax.random.uniform(k_w, (E,), jnp.float32, minval=0.1, maxval=1.0)

    out = edge_weight_norm(src, dst, edge_w, num_nodes=N, eps=0.0)
    out = jax.block_until_ready(out)

    ref = _reference(src, dst, edge_w, num_nodes=N, eps=0.0)
    assert out.shape == (E,) and out.dtype == jnp.float32
    assert jnp.allclose(out, ref, rtol=1e-5, atol=1e-5), (out, ref)

    print("KERNEL_OK")
</pallas_src>

<mosaic_0001>
module attributes {stable_mosaic.version = 11 : i64} {
  func.func @_degree_kernel(%arg0: i32, %arg1: i32, %arg2: memref<8x128xi32, #tpu.memory_space<vmem>>, %arg3: memref<8x128xi32, #tpu.memory_space<vmem>>, %arg4: memref<8x128xf32, #tpu.memory_space<vmem>>, %arg5: memref<1x128x128xf32, #tpu.memory_space<vmem>>, %arg6: memref<1x128x128xf32, #tpu.memory_space<vmem>>) attributes {dimension_semantics = [#tpu.dimension_semantics<parallel>, #tpu.dimension_semantics<arbitrary>], iteration_bounds = array<i64: 2, 1>, scalar_prefetch = 0 : i64, scratch_operands = 0 : i64, tpu.core_type = #tpu.core_type<tc>, window_params = [{transform_indices = @transform_0, window_bounds = array<i64: 8, 128>}, {transform_indices = @transform_1, window_bounds = array<i64: 8, 128>}, {transform_indices = @transform_2, window_bounds = array<i64: 8, 128>}, {transform_indices = @transform_3, window_bounds = array<i64: 1, 128, 128>}, {transform_indices = @transform_4, window_bounds = array<i64: 1, 128, 128>}]} {
    %c0_i32 = arith.constant 0 : i32
    %0 = arith.cmpi eq, %arg1, %c0_i32 : i32
    %1 = arith.extui %0 : i1 to i32
    %c0_i32_0 = arith.constant 0 : i32
    %2 = arith.cmpi ne, %1, %c0_i32_0 : i32
    scf.if %2 {
      %cst_35 = arith.constant 0.000000e+00 : f32
      %161 = vector.broadcast %cst_35 : f32 to vector<1x128x128xf32>
      %c0_36 = arith.constant 0 : index
      %c0_37 = arith.constant 0 : index
      %c0_38 = arith.constant 0 : index
      %162 = vector.load %arg5[%c0_36, %c0_37, %c0_38] : memref<1x128x128xf32, #tpu.memory_space<vmem>>, vector<1x128x128xf32>
      tpu.vector_store %arg5[%c0_36, %c0_37, %c0_38], %161 {strides = array<i32>} : memref<1x128x128xf32, #tpu.memory_space<vmem>>, vector<1x128x128xf32>,
      %cst_39 = arith.constant 0.000000e+00 : f32
      %163 = vector.broadcast %cst_39 : f32 to vector<1x128x128xf32>
      %c0_40 = arith.constant 0 : index
      %c0_41 = arith.constant 0 : index
      %c0_42 = arith.constant 0 : index
      %164 = vector.load %arg6[%c0_40, %c0_41, %c0_42] : memref<1x128x128xf32, #tpu.memory_space<vmem>>, vector<1x128x128xf32>
      tpu.vector_store %arg6[%c0_40, %c0_41, %c0_42], %163 {strides = array<i32>} : memref<1x128x128xf32, #tpu.memory_space<vmem>>, vector<1x128x128xf32>,
    } else {
    }
    %c0 = arith.constant 0 : index
    %c0_1 = arith.constant 0 : index
    %3 = vector.load %arg2[%c0, %c0_1] : memref<8x128xi32, #tpu.memory_space<vmem>>, vector<8x128xi32>
    %c0_2 = arith.constant 0 : index
    %c0_3 = arith.constant 0 : index
    %4 = vector.load %arg3[%c0_2, %c0_3] : memref<8x128xi32, #tpu.memory_space<vmem>>, vector<8x128xi32>
    %c0_4 = arith.constant 0 : index
    %c0_5 = arith.constant 0 : index
    %5 = vector.load %arg4[%c0_4, %c0_5] : memref<8x128xf32, #tpu.memory_space<vmem>>, vector<8x128xf32>
    %6 = tpu.iota {dimensions = array<i32: 0>} : vector<128x128xi32>
    %cst = arith.constant 0.000000e+00 : f32
    %7 = vector.broadcast %cst : f32 to vector<128x128xf32>
    %8 = vector.extract_strided_slice %3 {offsets = [0, 0], sizes = [1, 128], strides = [1, 1]} : vector<8x128xi32> to vector<1x128xi32>
    %9 = vector.broadcast %8 : vector<1x128xi32> to vector<128x128xi32>
    %10 = arith.cmpi eq, %6, %9 : vector<128x128xi32>
    %11 = vector.extract_strided_slice %5 {offsets = [0, 0], sizes = [1, 128], strides = [1, 1]} : vector<8x128xf32> to vector<1x128xf32>
    %cst_6 = arith.constant 0.000000e+00 : f32
    %12 = vector.shape_cast %11 : vector<1x128xf32> to vector<1x128xf32>
    %13 = vector.broadcast %12 : vector<1x128xf32> to vector<128x128xf32>
    %14 = vector.broadcast %cst_6 : f32 to vector<128x128xf32>
    %15 = arith.select %10, %13, %14 : vector<128x128xi1>, vector<128x128xf32>
    %16 = arith.addf %7, %15 : vector<128x128xf32>
    %17 = vector.extract_strided_slice %3 {offsets = [1, 0], sizes = [1, 128], strides = [1, 1]} : vector<8x128xi32> to vector<1x128xi32>
    %18 = vector.broadcast %17 : vector<1x128xi32> to vector<128x128xi32>
    %19 = arith.cmpi eq, %6, %18 : vector<128x128xi32>
    %20 = vector.extract_strided_slice %5 {offsets = [1, 0], sizes = [1, 128], strides = [1, 1]} : vector<8x128xf32> to vector<1x128xf32>
    %cst_7 = arith.constant 0.000000e+00 : f32
    %21 = vector.shape_cast %20 : vector<1x128xf32> to vector<1x128xf32>
    %22 = vector.broadcast %21 : vector<1x128xf32> to vector<128x128xf32>
    %23 = vector.broadcast %cst_7 : f32 to vector<128x128xf32>
    %24 = arith.select %19, %22, %23 : vector<128x128xi1>, vector<128x128xf32>
    %25 = arith.addf %16, %24 : vector<128x128xf32>
    %26 = vector.extract_strided_slice %3 {offsets = [2, 0], sizes = [1, 128], strides = [1, 1]} : vector<8x128xi32> to vector<1x128xi32>
    %27 = vector.broadcast %26 : vector<1x128xi32> to vector<128x128xi32>
    %28 = arith.cmpi eq, %6, %27 : vector<128x128xi32>
    %29 = vector.extract_strided_slice %5 {offsets = [2, 0], sizes = [1, 128], strides = [1, 1]} : vector<8x128xf32> to vector<1x128xf32>
    %cst_8 = arith.constant 0.000000e+00 : f32
    %30 = vector.shape_cast %29 : vector<1x128xf32> to vector<1x128xf32>
    %31 = vector.broadcast %30 : vector<1x128xf32> to vector<128x128xf32>
    %32 = vector.broadcast %cst_8 : f32 to vector<128x128xf32>
    %33 = arith.select %28, %31, %32 : vector<128x128xi1>, vector<128x128xf32>
    %34 = arith.addf %25, %33 : vector<128x128xf32>
    %35 = vector.extract_strided_slice %3 {offsets = [3, 0], sizes = [1, 128], strides = [1, 1]} : vector<8x128xi32> to vector<1x128xi32>
    %36 = vector.broadcast %35 : vector<1x128xi32> to vector<128x128xi32>
    %37 = arith.cmpi eq, %6, %36 : vector<128x128xi32>
    %38 = vector.extract_strided_slice %5 {offsets = [3, 0], sizes = [1, 128], strides = [1, 1]} : vector<8x128xf32> to vector<1x128xf32>
    %cst_9 = arith.constant 0.000000e+00 : f32
    %39 = vector.shape_cast %38 : vector<1x128xf32> to vector<1x128xf32>
    %40 = vector.broadcast %39 : vector<1x128xf32> to vector<128x128xf32>
    %41 = vector.broadcast %cst_9 : f32 to vector<128x128xf32>
    %42 = arith.select %37, %40, %41 : vector<128x128xi1>, vector<128x128xf32>
    %43 = arith.addf %34, %42 : vector<128x128xf32>
    %44 = vector.extract_strided_slice %3 {offsets = [4, 0], sizes = [1, 128], strides = [1, 1]} : vector<8x128xi32> to vector<1x128xi32>
    %45 = vector.broadcast %44 : vector<1x128xi32> to vector<128x128xi32>
    %46 = arith.cmpi eq, %6, %45 : vector<128x128xi32>
    %47 = vector.extract_strided_slice %5 {offsets = [4, 0], sizes = [1, 128], strides = [1, 1]} : vector<8x128xf32> to vector<1x128xf32>
    %cst_10 = arith.constant 0.000000e+00 : f32
    %48 = vector.shape_cast %47 : vector<1x128xf32> to vector<1x128xf32>
    %49 = vector.broadcast %48 : vector<1x128xf32> to vector<128x128xf32>
    %50 = vector.broadcast %cst_10 : f32 to vector<128x128xf32>
    %51 = arith.select %46, %49, %50 : vector<128x128xi1>, vector<128x128xf32>
    %52 = arith.addf %43, %51 : vector<128x128xf32>
    %53 = vector.extract_strided_slice %3 {offsets = [5, 0], sizes = [1, 128], strides = [1, 1]} : vector<8x128xi32> to vector<1x128xi32>
    %54 = vector.broadcast %53 : vector<1x128xi32> to vector<128x128xi32>
    %55 = arith.cmpi eq, %6, %54 : vector<128x128xi32>
    %56 = vector.extract_strided_slice %5 {offsets = [5, 0], sizes = [1, 128], strides = [1, 1]} : vector<8x128xf32> to vector<1x128xf32>
    %cst_11 = arith.constant 0.000000e+00 : f32
    %57 = vector.shape_cast %56 : vector<1x128xf32> to vector<1x128xf32>
    %58 = vector.broadcast %57 : vector<1x128xf32> to vector<128x128xf32>
    %59 = vector.broadcast %cst_11 : f32 to vector<128x128xf32>
    %60 = arith.select %55, %58, %59 : vector<128x128xi1>, vector<128x128xf32>
    %61 = arith.addf %52, %60 : vector<128x128xf32>
    %62 = vector.extract_strided_slice %3 {offsets = [6, 0], sizes = [1, 128], strides = [1, 1]} : vector<8x128xi32> to vector<1x128xi32>
    %63 = vector.broadcast %62 : vector<1x128xi32> to vector<128x128xi32>
    %64 = arith.cmpi eq, %6, %63 : vector<128x128xi32>
    %65 = vector.extract_strided_slice %5 {offsets = [6, 0], sizes = [1, 128], strides = [1, 1]} : vector<8x128xf32> to vector<1x128xf32>
    %cst_12 = arith.constant 0.000000e+00 : f32
    %66 = vector.shape_cast %65 : vector<1x128xf32> to vector<1x128xf32>
    %67 = vector.broadcast %66 : vector<1x128xf32> to vector<128x128xf32>
    %68 = vector.broadcast %cst_12 : f32 to vector<128x128xf32>
    %69 = arith.select %64, %67, %68 : vector<128x128xi1>, vector<128x128xf32>
    %70 = arith.addf %61, %69 : vector<128x128xf32>
    %71 = vector.extract_strided_slice %3 {offsets = [7, 0], sizes = [1, 128], strides = [1, 1]} : vector<8x128xi32> to vector<1x128xi32>
    %72 = vector.broadcast %71 : vector<1x128xi32> to vector<128x128xi32>
    %73 = arith.cmpi eq, %6, %72 : vector<128x128xi32>
    %74 = vector.extract_strided_slice %5 {offsets = [7, 0], sizes = [1, 128], strides = [1, 1]} : vector<8x128xf32> to vector<1x128xf32>
    %cst_13 = arith.constant 0.000000e+00 : f32
    %75 = vector.shape_cast %74 : vector<1x128xf32> to vector<1x128xf32>
    %76 = vector.broadcast %75 : vector<1x128xf32> to vector<128x128xf32>
    %77 = vector.broadcast %cst_13 : f32 to vector<128x128xf32>
    %78 = arith.select %73, %76, %77 : vector<128x128xi1>, vector<128x128xf32>
    %79 = arith.addf %70, %78 : vector<128x128xf32>
    %c0_14 = arith.constant 0 : index
    %c0_15 = arith.constant 0 : index
    %c0_16 = arith.constant 0 : index
    %80 = vector.load %arg5[%c0_14, %c0_15, %c0_16] : memref<1x128x128xf32, #tpu.memory_space<vmem>>, vector<1x128x128xf32>
    %81 = vector.shape_cast %79 : vector<128x128xf32> to vector<1x128x128xf32>
    %82 = arith.addf %80, %81 : vector<1x128x128xf32>
    %c0_17 = arith.constant 0 : index
    %c0_18 = arith.constant 0 : index
    %c0_19 = arith.constant 0 : index
    %83 = vector.load %arg5[%c0_17, %c0_18, %c0_19] : memref<1x128x128xf32, #tpu.memory_space<vmem>>, vector<1x128x128xf32>
    tpu.vector_store %arg5[%c0_17, %c0_18, %c0_19], %82 {strides = array<i32>} : memref<1x128x128xf32, #tpu.memory_space<vmem>>, vector<1x128x128xf32>,
    %cst_20 = arith.constant 0.000000e+00 : f32
    %84 = vector.broadcast %cst_20 : f32 to vector<128x128xf32>
    %85 = vector.extract_strided_slice %4 {offsets = [0, 0], sizes = [1, 128], strides = [1, 1]} : vector<8x128xi32> to vector<1x128xi32>
    %86 = vector.broadcast %85 : vector<1x128xi32> to vector<128x128xi32>
    %87 = arith.cmpi eq, %6, %86 : vector<128x128xi32>
    %88 = vector.extract_strided_slice %5 {offsets = [0, 0], sizes = [1, 128], strides = [1, 1]} : vector<8x128xf32> to vector<1x128xf32>
    %cst_21 = arith.constant 0.000000e+00 : f32
    %89 = vector.shape_cast %88 : vector<1x128xf32> to vector<1x128xf32>
    %90 = vector.broadcast %89 : vector<1x128xf32> to vector<128x128xf32>
    %91 = vector.broadcast %cst_21 : f32 to vector<128x128xf32>
    %92 = arith.select %87, %90, %91 : vector<128x128xi1>, vector<128x128xf32>
    %93 = arith.addf %84, %92 : vector<128x128xf32>
    %94 = vector.extract_strided_slice %4 {offsets = [1, 0], sizes = [1, 128], strides = [1, 1]} : vector<8x128xi32> to vector<1x128xi32>
    %95 = vector.broadcast %94 : vector<1x128xi32> to vector<128x128xi32>
    %96 = arith.cmpi eq, %6, %95 : vector<128x128xi32>
    %97 = vector.extract_strided_slice %5 {offsets = [1, 0], sizes = [1, 128], strides = [1, 1]} : vector<8x128xf32> to vector<1x128xf32>
    %cst_22 = arith.constant 0.000000e+00 : f32
    %98 = vector.shape_cast %97 : vector<1x128xf32> to vector<1x128xf32>
    %99 = vector.broadcast %98 : vector<1x128xf32> to vector<128x128xf32>
    %100 = vector.broadcast %cst_22 : f32 to vector<128x128xf32>
    %101 = arith.select %96, %99, %100 : vector<128x128xi1>, vector<128x128xf32>
    %102 = arith.addf %93, %101 : vector<128x128xf32>
    %103 = vector.extract_strided_slice %4 {offsets = [2, 0], sizes = [1, 128], strides = [1, 1]} : vector<8x128xi32> to vector<1x128xi32>
    %104 = vector.broadcast %103 : vector<1x128xi32> to vector<128x128xi32>
    %105 = arith.cmpi eq, %6, %104 : vector<128x128xi32>
    %106 = vector.extract_strided_slice %5 {offsets = [2, 0], sizes = [1, 128], strides = [1, 1]} : vector<8x128xf32> to vector<1x128xf32>
    %cst_23 = arith.constant 0.000000e+00 : f32
    %107 = vector.shape_cast %106 : vector<1x128xf32> to vector<1x128xf32>
    %108 = vector.broadcast %107 : vector<1x128xf32> to vector<128x128xf32>
    %109 = vector.broadcast %cst_23 : f32 to vector<128x128xf32>
    %110 = arith.select %105, %108, %109 : vector<128x128xi1>, vector<128x128xf32>
    %111 = arith.addf %102, %110 : vector<128x128xf32>
    %112 = vector.extract_strided_slice %4 {offsets = [3, 0], sizes = [1, 128], strides = [1, 1]} : vector<8x128xi32> to vector<1x128xi32>
    %113 = vector.broadcast %112 : vector<1x128xi32> to vector<128x128xi32>
    %114 = arith.cmpi eq, %6, %113 : vector<128x128xi32>
    %115 = vector.extract_strided_slice %5 {offsets = [3, 0], sizes = [1, 128], strides = [1, 1]} : vector<8x128xf32> to vector<1x128xf32>
    %cst_24 = arith.constant 0.000000e+00 : f32
    %116 = vector.shape_cast %115 : vector<1x128xf32> to vector<1x128xf32>
    %117 = vector.broadcast %116 : vector<1x128xf32> to vector<128x128xf32>
    %118 = vector.broadcast %cst_24 : f32 to vector<128x128xf32>
    %119 = arith.select %114, %117, %118 : vector<128x128xi1>, vector<128x128xf32>
    %120 = arith.addf %111, %119 : vector<128x128xf32>
    %121 = vector.extract_strided_slice %4 {offsets = [4, 0], sizes = [1, 128], strides = [1, 1]} : vector<8x128xi32> to vector<1x128xi32>
    %122 = vector.broadcast %121 : vector<1x128xi32> to vector<128x128xi32>
    %123 = arith.cmpi eq, %6, %122 : vector<128x128xi32>
    %124 = vector.extract_strided_slice %5 {offsets = [4, 0], sizes = [1, 128], strides = [1, 1]} : vector<8x128xf32> to vector<1x128xf32>
    %cst_25 = arith.constant 0.000000e+00 : f32
    %125 = vector.shape_cast %124 : vector<1x128xf32> to vector<1x128xf32>
    %126 = vector.broadcast %125 : vector<1x128xf32> to vector<128x128xf32>
    %127 = vector.broadcast %cst_25 : f32 to vector<128x128xf32>
    %128 = arith.select %123, %126, %127 : vector<128x128xi1>, vector<128x128xf32>
    %129 = arith.addf %120, %128 : vector<128x128xf32>
    %130 = vector.extract_strided_slice %4 {offsets = [5, 0], sizes = [1, 128], strides = [1, 1]} : vector<8x128xi32> to vector<1x128xi32>
    %131 = vector.broadcast %130 : vector<1x128xi32> to vector<128x128xi32>
    %132 = arith.cmpi eq, %6, %131 : vector<128x128xi32>
    %133 = vector.extract_strided_slice %5 {offsets = [5, 0], sizes = [1, 128], strides = [1, 1]} : vector<8x128xf32> to vector<1x128xf32>
    %cst_26 = arith.constant 0.000000e+00 : f32
    %134 = vector.shape_cast %133 : vector<1x128xf32> to vector<1x128xf32>
    %135 = vector.broadcast %134 : vector<1x128xf32> to vector<128x128xf32>
    %136 = vector.broadcast %cst_26 : f32 to vector<128x128xf32>
    %137 = arith.select %132, %135, %136 : vector<128x128xi1>, vector<128x128xf32>
    %138 = arith.addf %129, %137 : vector<128x128xf32>
    %139 = vector.extract_strided_slice %4 {offsets = [6, 0], sizes = [1, 128], strides = [1, 1]} : vector<8x128xi32> to vector<1x128xi32>
    %140 = vector.broadcast %139 : vector<1x128xi32> to vector<128x128xi32>
    %141 = arith.cmpi eq, %6, %140 : vector<128x128xi32>
    %142 = vector.extract_strided_slice %5 {offsets = [6, 0], sizes = [1, 128], strides = [1, 1]} : vector<8x128xf32> to vector<1x128xf32>
    %cst_27 = arith.constant 0.000000e+00 : f32
    %143 = vector.shape_cast %142 : vector<1x128xf32> to vector<1x128xf32>
    %144 = vector.broadcast %143 : vector<1x128xf32> to vector<128x128xf32>
    %145 = vector.broadcast %cst_27 : f32 to vector<128x128xf32>
    %146 = arith.select %141, %144, %145 : vector<128x128xi1>, vector<128x128xf32>
    %147 = arith.addf %138, %146 : vector<128x128xf32>
    %148 = vector.extract_strided_slice %4 {offsets = [7, 0], sizes = [1, 128], strides = [1, 1]} : vector<8x128xi32> to vector<1x128xi32>
    %149 = vector.broadcast %148 : vector<1x128xi32> to vector<128x128xi32>
    %150 = arith.cmpi eq, %6, %149 : vector<128x128xi32>
    %151 = vector.extract_strided_slice %5 {offsets = [7, 0], sizes = [1, 128], strides = [1, 1]} : vector<8x128xf32> to vector<1x128xf32>
    %cst_28 = arith.constant 0.000000e+00 : f32
    %152 = vector.shape_cast %151 : vector<1x128xf32> to vector<1x128xf32>
    %153 = vector.broadcast %152 : vector<1x128xf32> to vector<128x128xf32>
    %154 = vector.broadcast %cst_28 : f32 to vector<128x128xf32>
    %155 = arith.select %150, %153, %154 : vector<128x128xi1>, vector<128x128xf32>
    %156 = arith.addf %147, %155 : vector<128x128xf32>
    %c0_29 = arith.constant 0 : index
    %c0_30 = arith.constant 0 : index
    %c0_31 = arith.constant 0 : index
    %157 = vector.load %arg6[%c0_29, %c0_30, %c0_31] : memref<1x128x128xf32, #tpu.memory_space<vmem>>, vector<1x128x128xf32>
    %158 = vector.shape_cast %156 : vector<128x128xf32> to vector<1x128x128xf32>
    %159 = arith.addf %157, %158 : vector<1x128x128xf32>
    %c0_32 = arith.constant 0 : index
    %c0_33 = arith.constant 0 : index
    %c0_34 = arith.constant 0 : index
    %160 = vector.load %arg6[%c0_32, %c0_33, %c0_34] : memref<1x128x128xf32, #tpu.memory_space<vmem>>, vector<1x128x128xf32>
    tpu.vector_store %arg6[%c0_32, %c0_33, %c0_34], %159 {strides = array<i32>} : memref<1x128x128xf32, #tpu.memory_space<vmem>>, vector<1x128x128xf32>,
    return
  }
  func.func @transform_0(%arg0: i32, %arg1: i32) -> (i32, i32) {
    %c1_i32 = arith.constant 1 : i32
    %0 = arith.muli %arg0, %c1_i32 : i32
    %1 = arith.addi %0, %arg1 : i32
    %c0_i32 = arith.constant 0 : i32
    %c0_i32_0 = arith.constant 0 : i32
    return %1, %c0_i32 : i32, i32
  }
  func.func @transform_1(%arg0: i32, %arg1: i32) -> (i32, i32) {
    %c1_i32 = arith.constant 1 : i32
    %0 = arith.muli %arg0, %c1_i32 : i32
    %1 = arith.addi %0, %arg1 : i32
    %c0_i32 = arith.constant 0 : i32
    %c0_i32_0 = arith.constant 0 : i32
    return %1, %c0_i32 : i32, i32
  }
  func.func @transform_2(%arg0: i32, %arg1: i32) -> (i32, i32) {
    %c1_i32 = arith.constant 1 : i32
    %0 = arith.muli %arg0, %c1_i32 : i32
    %1 = arith.addi %0, %arg1 : i32
    %c0_i32 = arith.constant 0 : i32
    %c0_i32_0 = arith.constant 0 : i32
    return %1, %c0_i32 : i32, i32
  }
  func.func @transform_3(%arg0: i32, %arg1: i32) -> (i32, i32, i32) {
    %c0_i32 = arith.constant 0 : i32
    %c0_i32_0 = arith.constant 0 : i32
    %c0_i32_1 = arith.constant 0 : i32
    return %arg0, %c0_i32, %c0_i32_0 : i32, i32, i32
  }
  func.func @transform_4(%arg0: i32, %arg1: i32) -> (i32, i32, i32) {
    %c0_i32 = arith.constant 0 : i32
    %c0_i32_0 = arith.constant 0 : i32
    %c0_i32_1 = arith.constant 0 : i32
    return %arg0, %c0_i32, %c0_i32_0 : i32, i32, i32
  }
}

</mosaic_0001>

<bundles_post_ra>
// kernel: tpu_custom_call.1
= control target key start
LH: loop header
LB: loop body
LE: loop exit
PB: predicated region body
PF: predicated region fallthrough
CT: control target
= control target key end

     0   :  { %s3084_s0 = inlined_call_operand.hbm [shape: s32[16,128], index: 0, kind: input, shape index: {}]   ;;  %s3085_s1 = inlined_call_operand.hbm [shape: s32[16,128], index: 1, kind: input, shape index: {}]   ;;  %s3086_s2 = inlined_call_operand.hbm [shape: f32[16,128], index: 2, kind: input, shape index: {}]   ;;  %s3087_s3 = inlined_call_operand.hbm [shape: f32[2,128,128], index: 3, kind: output, shape index: {0}]   ;;  %s3088_s4 = inlined_call_operand.hbm [shape: f32[2,128,128], index: 4, kind: output, shape index: {1}]  }
   0x1   :  { %3092 = sst [smem:[#allocation18_spill]] %s3085_s1 }
   0x2   :  { %10 = vsyncpa [#allocation3], 0 }
   0x3   :  { %12 = vsyncpa [#allocation3 + $0x1], 0 }
   0x4   :  { %13 = vsyncpa [#allocation6], 0 }
   0x5   :  { %15 = vsyncpa [#allocation6 + $0x1], 0 }
   0x6   :  { %16 = vsyncpa [#allocation4], 0 }
   0x7   :  { %18 = vsyncpa [#allocation4 + $0x1], 0 }
   0x8   :  { %19 = vsyncpa [#allocation10], 0 }
   0x9   :  { %21 = vsyncpa [#allocation10 + $0x1], 0  ;;  %s1867_s15 = smov 0   ;;  %s1869_s16 = smov 0  }
   0xa   :  { %s1871_s17 = smov 0   ;;  %s1873_s18 = smov 0  }
   0xb   :  { %s1875_s19 = smov 0   ;;  %s1877_s20 = smov 0  }
   0xc LB: > { %3093 = sst [smem:[#allocation15_spill]] %s1829_s19  ;;  %s1898_s21 = sadd.s32 4294967295, %s1833_s20   ;;  %s1833_s20 = sphi %s1877_s20, %s27_s20   ;;  %s1829_s19 = sphi %s1875_s19, %s3107_s19   ;;  %s1825_s18 = sphi %s1873_s18, %s3106_s18   ;;  %s1821_s17 = sphi %s1871_s17, %s3110_s17   ;;  %s1817_s16 = sphi %s1869_s16, %s3109_s16   ;;  %s1813_s15 = sphi %s1867_s15, %s3108_s15  }
   0xd   : > { %s1530_s22 = sadd.s32 4294967294, %s1833_s20   ;;  %s39_s23 = sadd.s32 1, %s1829_s19 }
   0xe   : > { %s48_s24 = sadd.s32 1, %s1821_s17  ;;  %p41_p0 = scmp.ge.s32.totalorder %s39_s23, 2 }
   0xf   : > { %p55_p1 = scmp.ne.s32.totalorder %s1821_s17, %s1817_s16  ;;  %p56_p2 = scmp.eq.s32.totalorder %s1833_s20, 0 }
  0x10   : > { %p61_p3 = scmp.ne.s32.totalorder %s1817_s16, %s1813_s15  ;;  %s3112_s23 = smov (%p41_p0, %s39_s23), 0 }
  0x11   : > { %3094 = sst [smem:[#allocation16_spill]] %s3112_s23  ;;  %p1910_p4 = por %p56_p2, %p55_p1 }
  0x12   : > { %p62_p5 = scmp.eq.s32.totalorder %s1898_s21, 0  ;;  %s45_s26 = ssub.s32 %s1829_s19, %s3112_s23 }
  0x13   : > { %p141_p6 = scmp.eq.s32.totalorder %s1898_s21, 1  ;;  %p46_p7 = scmp.eq.s32.totalorder %s45_s26, 0 }
  0x14   : > { %p1918_p8 = por %p62_p5, %p61_p3  ;;  %p147_p10 = scmp.eq.s32.totalorder %s1530_s22, 1 }
  0x15   : > { %p1922_p9 = por %p141_p6, %p55_p1  ;;  %p1582_p13 = scmp.lt.s32.totalorder %s1833_s20, 2 }
  0x16   : > { %s1927_s29 = scalar_select %p46_p7, %s1821_s17, %s48_s24  }
  0x17   : > { %p1929_p11 = por %p147_p10, %p61_p3  ;;  %s3089_s5 = sand.u32 1, %s1821_s17  }
  0x18   : > { %3098 = sst [smem:[#allocation17_spill]] %s1927_s29  ;;  %s1938_s6 = sshll.u32 %s3089_s5, 3 }
  0x19   : > { %s1941_s7 = sshll.u32 %s1829_s19, 7  ;;  %p1945_p0 = pnand %p1582_p13, %p1910_p4 }
  0x1a   : > { %s212_s9 = sand.u32 1, %s1833_s20   ;;  %s3101_s1 = sld [smem:[#allocation18_spill]] }
  0x1b   : > { %s216_s13 = scalar_lea.vmem [#allocation5], %s1938_s6  ;;  %p1539_p1 = scmp.ge.s32.totalorder %s1833_s20, 1 }
  0x1c   : > { %s224_s14 = sshll.u32 %s216_s13, 4  ;;  %p248_p2 = scmp.lt.s32.totalorder %s1833_s20, 3  ;;  %s225_s14 = int_to_ptr.vmem [resolvable:$true] %s224_s14 }
  0x1d   : > { %s1957_s22 = scalar_lea.sflag [#allocation6], %s212_s9  ;;  %p1637_p3 = pneg %p1945_p0 }
  0x1e   : > { %s1648_s24 = scalar_lea.vmem %s225_s14, 128  ;;  %s1835_s25 = smov [#allocation5]  }
  0x1f   : > { %p1649_p4 = scmp.ne.s32.totalorder %s225_s14, %s1648_s24  ;;  %s1653_s26 = sshll.u32 %s1835_s25, 4  ;;  %s1654_s26 = int_to_ptr.vmem [resolvable:$false] %s1653_s26 }
  0x20   : > { %s222_s12 = scalar_lea.hbm %s3101_s1, %s1941_s7  ;;  %s1655_s10 = scalar_lea.vmem %s1654_s26, 256 }
  0x21   : > { %p1651_p5 = pnand %p1649_p4, %p1637_p3  ;;  %p1656_p7 = scmp.lt.s32.totalorder %s225_s14, %s1654_s26 }
  0x22   : > { %p1657_p10 = scmp.lt.s32.totalorder %s1655_s10, %s1648_s24 }
  0x23   : > { %p1652_p6 = pneg %p1651_p5 }
  0x24   : > { %p1658_p13 = por %p1657_p10, %p1656_p7 }
  0x26   : > { %p1659_p12 = pnand %p1658_p13, %p1652_p6 }
  0x28   : > { %1662 = shalt.err (!%p1659_p12)
}
  0x29   : > { %1571 = dma.hbm_to_vmem [thread:$0]  (!%p1945_p0), %s222_s12, 128, %s225_s14, %s1957_s22  }
  0x2a   : > { %p1971_p4 = pnand %p1539_p1, %p248_p2  ;;  %s203_s24 = scalar_lea.hbm %s3084_s0, %s1941_s7 }
  0x2b   : > { %s197_s25 = scalar_lea.vmem [#allocation2], %s1938_s6  ;;  %s241_s1 = scalar_lea.hbm %s3086_s2, %s1941_s7 }
  0x2c   : > { %s205_s26 = sshll.u32 %s197_s25, 4  ;;  %s3103_s23 = sand.u32 1, %s1821_s17   ;;  %s206_s26 = int_to_ptr.vmem [resolvable:$true] %s205_s26 }
  0x2d   : > { %s194_s19 = scalar_lea.sflag [#allocation3], %s3103_s23  ;;  %s1676_s12 = scalar_lea.vmem %s206_s26, 128 }
  0x2e   : > { %p1677_p12 = scmp.ne.s32.totalorder %s206_s26, %s1676_s12  ;;  %s1836_s14 = smov [#allocation2]  }
  0x2f   : > { %s1681_s29 = sshll.u32 %s1836_s14, 4  ;;  %s1682_s29 = int_to_ptr.vmem [resolvable:$false] %s1681_s29 }
  0x30   : > { %p1679_p1 = pnand %p1677_p12, %p1637_p3  ;;  %s1683_s11 = scalar_lea.vmem %s1682_s29, 256 }
  0x31   : > { %p1684_p5 = scmp.lt.s32.totalorder %s206_s26, %s1682_s29  ;;  %p1685_p6 = scmp.lt.s32.totalorder %s1683_s11, %s1676_s12 }
  0x32   : > { %p1680_p2 = pneg %p1679_p1 }
  0x33   : > { %p1686_p7 = por %p1685_p6, %p1684_p5 }
  0x35   : > { %p1687_p10 = pnand %p1686_p7, %p1680_p2 }
  0x37   : > { %1690 = shalt.err (!%p1687_p10)
}
  0x38   : > { %1568 = dma.hbm_to_vmem [thread:$0]  (!%p1945_p0), %s203_s24, 128, %s206_s26, %s194_s19  }
  0x39   : > { %s235_s23 = scalar_lea.vmem [#allocation7], %s1938_s6  ;;  %s1837_s25 = smov [#allocation7]  }
  0x3a   : > { %s243_s5 = sshll.u32 %s235_s23, 4  ;;  %s1709_s29 = sshll.u32 %s1837_s25, 4  ;;  %s244_s5 = int_to_ptr.vmem [resolvable:$true] %s243_s5  ;;  %s1710_s29 = int_to_ptr.vmem [resolvable:$false] %s1709_s29 }
  0x3b   : > { %s1704_s13 = scalar_lea.vmem %s244_s5, 128  ;;  %s1711_s10 = scalar_lea.vmem %s1710_s29, 256 }
  0x3c   : > { %p1705_p13 = scmp.ne.s32.totalorder %s244_s5, %s1704_s13  ;;  %p1712_p2 = scmp.lt.s32.totalorder %s244_s5, %s1710_s29 }
  0x3d   : > { %p1713_p5 = scmp.lt.s32.totalorder %s1711_s10, %s1704_s13 }
  0x3e   : > { %p1707_p12 = pnand %p1705_p13, %p1637_p3 }
  0x3f   : > { %p1714_p6 = por %p1713_p5, %p1712_p2 }
  0x40   : > { %p1708_p1 = pneg %p1707_p12 }
  0x42   : > { %p1715_p7 = pnand %p1714_p6, %p1708_p1 }
  0x44   : > { %1718 = shalt.err (!%p1715_p7)
}
  0x45   : > { %1574 = dma.hbm_to_vmem [thread:$0]  (!%p1945_p0), %s241_s1, 128, %s244_s5, %s1957_s22  }
  0x46   : > { %252 = sbr.rel (%p1971_p4) target bundleno = 312 (0x138), region = 32  ;;  %s2006_s24 = sand.u32 (!%p1971_p4), 1, %s1817_s16  }
  0x47   : > { %s2009_s26 = sshll.u32 (!%p1971_p4), %s2006_s24, 3  ;;  %s255_s8 = scalar_lea.sflag (!%p1971_p4), [#allocation3], %s2006_s24 }
  0x48   : > { %s258_s12 = scalar_lea.vmem (!%p1971_p4), [#allocation2], %s2009_s26 }
  0x4b   : > { %1796 = dma.done.wait (%p1918_p8), %s255_s8, 128  }
  0x4c   : > { %1798 = vsyncadd (%p1918_p8), %s255_s8, 4294967168  ;;  %s263_s1 = sand.u32 1, %s1898_s21   ;;  %s267_s22 = scalar_lea.vmem [#allocation5], %s2009_s26 }
  0x4d   : > { %s264_s7 = scalar_lea.sflag [#allocation6], %s263_s1 }
  0x4e   : > { %1800 = dma.done.wait (%p1918_p8), %s264_s7, 256  }
  0x4f   : > { %1802 = vsyncadd (%p1918_p8), %s264_s7, 4294967040  ;;  %v358_v0 = vlaneseq  ;;  %v355_v14 = vld [vmem:[%s258_s12] sm:$0xff]  ;;  %s276_s21 = scalar_lea.vmem [#allocation7], %s2009_s26  ;;  %s1543_s27 = sshll.u32 %s2006_s24, 7 }
  0x50   : > { %v357_v15 = vld [vmem:[%s276_s21] sm:$0xff]  ;;  %s2200_s9 = scalar_lea.vmem [#allocation8], %s1543_s27  ;;  %s1553_s14 = sshll.u32 %s1825_s18, 11 }
  0x51   : > { %v2023_v1 = vshrl.u32 %v358_v0, 7  ;;  %s1354_s11 = sshll.u32 %s2200_s9, 4  ;;  %s2608_s13 = scalar_lea.hbm %s3087_s3, %s1553_s14  ;;  %s2610_s11 = int_to_ptr.vmem [resolvable:$true] %s1354_s11 }
  0x52   : > { %s1336_s25 = scalar_lea.sflag [#allocation4], %s2006_s24  ;;  %s1719_s29 = scalar_lea.vmem %s2610_s11, 2048 }
  0x53   : > { %v2026_v2 = vsub.s32 0, %v2023_v1  ;;  %v2029_v3 = vsub.s32 1, %v2023_v1  ;;  %v2032_v4 = vsub.s32 2, %v2023_v1  ;;  %v2035_v5 = vsub.s32 3, %v2023_v1  ;;  %p1720_p8 = scmp.ne.s32.totalorder %s2610_s11, %s1719_s29  ;;  %s1838_s10 = smov [#allocation8]  }
  0x54   : > { %v2038_v6 = vsub.s32 4, %v2023_v1  ;;  %v2041_v7 = vsub.s32 5, %v2023_v1  ;;  %v2044_v8 = vsub.s32 6, %v2023_v1  ;;  %v2047_v9 = vsub.s32 7, %v2023_v1  ;;  %s1723_s19 = sshll.u32 %s1838_s10, 4  ;;  %s1724_s19 = int_to_ptr.vmem [resolvable:$false] %s1723_s19 }
  0x55   : > { %v2050_v10 = vadd.s32 8, %v2023_v1  ;;  %v2053_v11 = vadd.s32 16, %v2023_v1  ;;  %v2056_v12 = vadd.s32 24, %v2023_v1  ;;  %v2059_v13 = vadd.s32 32, %v2023_v1  ;;  %p1721_p0 = pnand %p1720_p8, %p1922_p9  ;;  %s1725_s6 = scalar_lea.vmem %s1724_s19, 4096 }
  0x56   : > { %v2063_v16 = vadd.s32 40, %v2023_v1  ;;  %v2066_v17 = vadd.s32 48, %v2023_v1  ;;  %v2069_v18 = vadd.s32 56, %v2023_v1  ;;  %v2072_v19 = vadd.s32 64, %v2023_v1  ;;  %p1726_p4 = scmp.lt.s32.totalorder %s2610_s11, %s1724_s19  ;;  %p1727_p10 = scmp.lt.s32.totalorder %s1725_s6, %s1719_s29 }
  0x57   : > { %v2075_v20 = vrot.slane %v355_v14, %v2026_v2  ;;  %v2078_v21 = vrot.slane %v357_v15, %v2026_v2  ;;  %v2081_v22 = vrot.slane %v355_v14, %v2029_v3  ;;  %v2084_v23 = vrot.slane %v357_v15, %v2029_v3  ;;  %p1722_p3 = pneg %p1721_p0 }
  0x58   : > { %v2087_v24 = vrot.slane %v355_v14, %v2032_v4  ;;  %v2090_v25 = vrot.slane %v357_v15, %v2032_v4  ;;  %v2093_v26 = vrot.slane %v355_v14, %v2035_v5  ;;  %v2096_v27 = vrot.slane %v357_v15, %v2035_v5  ;;  %p1728_p13 = por %p1727_p10, %p1726_p4 }
  0x59   : > { %vm379_vm0 = vcmp.eq.s32.totalorder %v2023_v1, %v2075_v20  ;;  %vm435_vm1 = vcmp.eq.s32.totalorder %v2023_v1, %v2081_v22  ;;  %v2103_v28 = vrot.slane %v355_v14, %v2038_v6  ;;  %v2106_v29 = vrot.slane %v357_v15, %v2038_v6 }
  0x5a   : > { %v399_v30 = vsel %vm379_vm0, %v2078_v21, 0.0  ;;  %v455_v31 = vsel %vm435_vm1, %v2084_v23, 0.0  ;;  %vm491_vm2 = vcmp.eq.s32.totalorder %v2023_v1, %v2087_v24  ;;  %vm547_vm3 = vcmp.eq.s32.totalorder %v2023_v1, %v2093_v26  ;;  %p1729_p12 = pnand %p1728_p13, %p1722_p3 }
  0x5b   : > { %v471_v32 = vadd.f32 %v455_v31, %v399_v30  ;;  %v511_v33 = vsel %vm491_vm2, %v2090_v25, 0.0  ;;  %v567_v34 = vsel %vm547_vm3, %v2096_v27, 0.0  ;;  %vm603_vm4 = vcmp.eq.s32.totalorder %v2023_v1, %v2103_v28 }
  0x5c   : > { %v623_v35 = vsel %vm603_vm4, %v2106_v29, 0.0  ;;  %v2120_v36 = vrot.slane %v355_v14, %v2041_v7  ;;  %v2123_v37 = vrot.slane %v357_v15, %v2041_v7  ;;  %v2126_v38 = vrot.slane %v355_v14, %v2044_v8 }
  0x5d   : > { %v527_v39 = vadd.f32 %v511_v33, %v471_v32  ;;  %v2129_v40 = vrot.slane %v357_v15, %v2044_v8  ;;  %v2132_v41 = vrot.slane %v355_v14, %v2047_v9  ;;  %v2135_v42 = vrot.slane %v357_v15, %v2047_v9 }
  0x5e   : > { %vm659_vm5 = vcmp.eq.s32.totalorder %v2023_v1, %v2120_v36  ;;  %vm715_vm6 = vcmp.eq.s32.totalorder %v2023_v1, %v2126_v38  ;;  %vm380_vm7 = vcmp.eq.s32.totalorder %v2050_v10, %v2075_v20  ;;  %vm436_vm8 = vcmp.eq.s32.totalorder %v2050_v10, %v2081_v22 }
  0x5f   : > { %v583_v43 = vadd.f32 %v567_v34, %v527_v39  ;;  %v679_v44 = vsel %vm659_vm5, %v2123_v37, 0.0  ;;  %v735_v45 = vsel %vm715_vm6, %v2129_v40, 0.0  ;;  %vm771_vm9 = vcmp.eq.s32.totalorder %v2023_v1, %v2132_v41 }
  0x60   : > { %v791_v46 = vsel %vm771_vm9, %v2135_v42, 0.0  ;;  %v400_v47 = vsel %vm380_vm7, %v2078_v21, 0.0  ;;  %v456_v48 = vsel %vm436_vm8, %v2084_v23, 0.0  ;;  %vm492_vm10 = vcmp.eq.s32.totalorder %v2050_v10, %v2087_v24 }
  0x61   : > { %v639_v49 = vadd.f32 %v623_v35, %v583_v43  ;;  %v472_v50 = vadd.f32 %v456_v48, %v400_v47  ;;  %v512_v51 = vsel %vm492_vm10, %v2090_v25, 0.0  ;;  %vm548_vm11 = vcmp.eq.s32.totalorder %v2050_v10, %v2093_v26 }
  0x62   : > { %v568_v52 = vsel %vm548_vm11, %v2096_v27, 0.0  ;;  %vm604_vm12 = vcmp.eq.s32.totalorder %v2050_v10, %v2103_v28  ;;  %vm660_vm13 = vcmp.eq.s32.totalorder %v2050_v10, %v2120_v36  ;;  %vm716_vm14 = vcmp.eq.s32.totalorder %v2050_v10, %v2126_v38 }
  0x63   : > { %v695_v53 = vadd.f32 %v679_v44, %v639_v49  ;;  %v528_v54 = vadd.f32 %v512_v51, %v472_v50  ;;  %v624_v55 = vsel %vm604_vm12, %v2106_v29, 0.0  ;;  %v680_v56 = vsel %vm660_vm13, %v2123_v37, 0.0 }
  0x64   : > { %v736_v57 = vsel %vm716_vm14, %v2129_v40, 0.0  ;;  %vm772_vm15 = vcmp.eq.s32.totalorder %v2050_v10, %v2132_v41  ;;  %vm381_vm0 = vcmp.eq.s32.totalorder %v2053_v11, %v2075_v20  ;;  %vm437_vm1 = vcmp.eq.s32.totalorder %v2053_v11, %v2081_v22 }
  0x65   : > { %v751_v58 = vadd.f32 %v735_v45, %v695_v53  ;;  %v584_v59 = vadd.f32 %v568_v52, %v528_v54  ;;  %v792_v60 = vsel %vm772_vm15, %v2135_v42, 0.0  ;;  %v401_v61 = vsel %vm381_vm0, %v2078_v21, 0.0 }
  0x66   : > { %v457_v62 = vsel %vm437_vm1, %v2084_v23, 0.0  ;;  %vm493_vm2 = vcmp.eq.s32.totalorder %v2053_v11, %v2087_v24  ;;  %vm549_vm3 = vcmp.eq.s32.totalorder %v2053_v11, %v2093_v26  ;;  %vm605_vm4 = vcmp.eq.s32.totalorder %v2053_v11, %v2103_v28 }
  0x67   : > { %v807_v63 = vadd.f32 %v791_v46, %v751_v58  ;;  %v640_v0 = vadd.f32 %v624_v55, %v584_v59  ;;  %v473_v14 = vadd.f32 %v457_v62, %v401_v61  ;;  %v513_v15 = vsel %vm493_vm2, %v2090_v25, 0.0 }
  0x68   : > { %v569_v30 = vsel %vm549_vm3, %v2096_v27, 0.0  ;;  %v625_v31 = vsel %vm605_vm4, %v2106_v29, 0.0  ;;  %vm661_vm5 = vcmp.eq.s32.totalorder %v2053_v11, %v2120_v36  ;;  %vm717_vm6 = vcmp.eq.s32.totalorder %v2053_v11, %v2126_v38 }
  0x69   : > { %v696_v32 = vadd.f32 %v680_v56, %v640_v0  ;;  %v529_v33 = vadd.f32 %v513_v15, %v473_v14  ;;  %v681_v34 = vsel %vm661_vm5, %v2123_v37, 0.0  ;;  %v737_v35 = vsel %vm717_vm6, %v2129_v40, 0.0  ;;  %855 = vst [vmem:[%s2200_s9] sm:$0xff] %v807_v63 }
  0x6a   : > { %vm773_vm7 = vcmp.eq.s32.totalorder %v2053_v11, %v2132_v41  ;;  %vm382_vm8 = vcmp.eq.s32.totalorder %v2056_v12, %v2075_v20  ;;  %vm438_vm9 = vcmp.eq.s32.totalorder %v2056_v12, %v2081_v22  ;;  %vm494_vm10 = vcmp.eq.s32.totalorder %v2056_v12, %v2087_v24 }
  0x6b   : > { %v752_v39 = vadd.f32 %v736_v57, %v696_v32  ;;  %v585_v43 = vadd.f32 %v569_v30, %v529_v33  ;;  %v793_v44 = vsel %vm773_vm7, %v2135_v42, 0.0  ;;  %v402_v45 = vsel %vm382_vm8, %v2078_v21, 0.0 }
  0x6c   : > { %v458_v46 = vsel %vm438_vm9, %v2084_v23, 0.0  ;;  %vm550_vm11 = vcmp.eq.s32.totalorder %v2056_v12, %v2093_v26  ;;  %vm606_vm12 = vcmp.eq.s32.totalorder %v2056_v12, %v2103_v28  ;;  %v514_v50 = vsel %vm494_vm10, %v2090_v25, 0.0 }
  0x6d   : > { %v808_v47 = vadd.f32 %v792_v60, %v752_v39  ;;  %v641_v48 = vadd.f32 %v625_v31, %v585_v43  ;;  %v474_v49 = vadd.f32 %v458_v46, %v402_v45  ;;  %v570_v51 = vsel %vm550_vm11, %v2096_v27, 0.0 }
  0x6e   : > { %v626_v52 = vsel %vm606_vm12, %v2106_v29, 0.0  ;;  %vm662_vm13 = vcmp.eq.s32.totalorder %v2056_v12, %v2120_v36  ;;  %vm718_vm14 = vcmp.eq.s32.totalorder %v2056_v12, %v2126_v38  ;;  %vm774_vm15 = vcmp.eq.s32.totalorder %v2056_v12, %v2132_v41 }
  0x6f   : > { %v697_v53 = vadd.f32 %v681_v34, %v641_v48  ;;  %v530_v54 = vadd.f32 %v514_v50, %v474_v49  ;;  %v682_v55 = vsel %vm662_vm13, %v2123_v37, 0.0  ;;  %v738_v56 = vsel %vm718_vm14, %v2129_v40, 0.0  ;;  %856 = vst [vmem:[%s2200_s9 + $0x8] sm:$0xff] %v808_v47 }
  0x70   : > { %vm383_vm0 = vcmp.eq.s32.totalorder %v2059_v13, %v2075_v20  ;;  %vm439_vm1 = vcmp.eq.s32.totalorder %v2059_v13, %v2081_v22  ;;  %v794_v59 = vsel %vm774_vm15, %v2135_v42, 0.0  ;;  %vm495_vm2 = vcmp.eq.s32.totalorder %v2059_v13, %v2087_v24 }
  0x71   : > { %v753_v57 = vadd.f32 %v737_v35, %v697_v53  ;;  %v586_v58 = vadd.f32 %v570_v51, %v530_v54  ;;  %v403_v60 = vsel %vm383_vm0, %v2078_v21, 0.0  ;;  %v459_v61 = vsel %vm439_vm1, %v2084_v23, 0.0 }
  0x72   : > { %vm551_vm3 = vcmp.eq.s32.totalorder %v2059_v13, %v2093_v26  ;;  %vm607_vm4 = vcmp.eq.s32.totalorder %v2059_v13, %v2103_v28  ;;  %v475_v0 = vadd.f32 %v459_v61, %v403_v60  ;;  %v515_v14 = vsel %vm495_vm2, %v2090_v25, 0.0 }
  0x73   : > { %v809_v62 = vadd.f32 %v793_v44, %v753_v57  ;;  %v642_v63 = vadd.f32 %v626_v52, %v586_v58  ;;  %v571_v15 = vsel %vm551_vm3, %v2096_v27, 0.0  ;;  %v627_v30 = vsel %vm607_vm4, %v2106_v29, 0.0 }
  0x74   : > { %vm663_vm5 = vcmp.eq.s32.totalorder %v2059_v13, %v2120_v36  ;;  %vm719_vm6 = vcmp.eq.s32.totalorder %v2059_v13, %v2126_v38  ;;  %v531_v32 = vadd.f32 %v515_v14, %v475_v0  ;;  %vm775_vm7 = vcmp.eq.s32.totalorder %v2059_v13, %v2132_v41 }
  0x75   : > { %v698_v31 = vadd.f32 %v682_v55, %v642_v63  ;;  %v683_v33 = vsel %vm663_vm5, %v2123_v37, 0.0  ;;  %v739_v34 = vsel %vm719_vm6, %v2129_v40, 0.0  ;;  %vm384_vm8 = vcmp.eq.s32.totalorder %v2063_v16, %v2075_v20  ;;  %857 = vst [vmem:[%s2200_s9 + $0x10] sm:$0xff] %v809_v62 }
  0x76   : > { %vm440_vm9 = vcmp.eq.s32.totalorder %v2063_v16, %v2081_v22  ;;  %v587_v39 = vadd.f32 %v571_v15, %v531_v32  ;;  %v795_v43 = vsel %vm775_vm7, %v2135_v42, 0.0  ;;  %v404_v44 = vsel %vm384_vm8, %v2078_v21, 0.0 }
  0x77   : > { %v754_v35 = vadd.f32 %v738_v56, %v698_v31  ;;  %v460_v45 = vsel %vm440_vm9, %v2084_v23, 0.0  ;;  %vm496_vm10 = vcmp.eq.s32.totalorder %v2063_v16, %v2087_v24  ;;  %vm552_vm11 = vcmp.eq.s32.totalorder %v2063_v16, %v2093_v26 }
  0x78   : > { %vm608_vm12 = vcmp.eq.s32.totalorder %v2063_v16, %v2103_v28  ;;  %v643_v47 = vadd.f32 %v627_v30, %v587_v39  ;;  %v476_v48 = vadd.f32 %v460_v45, %v404_v44  ;;  %v516_v49 = vsel %vm496_vm10, %v2090_v25, 0.0 }
  0x79   : > { %v810_v46 = vadd.f32 %v794_v59, %v754_v35  ;;  %v572_v50 = vsel %vm552_vm11, %v2096_v27, 0.0  ;;  %v628_v51 = vsel %vm608_vm12, %v2106_v29, 0.0  ;;  %vm664_vm13 = vcmp.eq.s32.totalorder %v2063_v16, %v2120_v36 }
  0x7a   : > { %vm720_vm14 = vcmp.eq.s32.totalorder %v2063_v16, %v2126_v38  ;;  %v699_v52 = vadd.f32 %v683_v33, %v643_v47  ;;  %v532_v53 = vadd.f32 %v516_v49, %v476_v48  ;;  %v684_v54 = vsel %vm664_vm13, %v2123_v37, 0.0 }
  0x7b   : > { %v740_v55 = vsel %vm720_vm14, %v2129_v40, 0.0  ;;  %vm776_vm15 = vcmp.eq.s32.totalorder %v2063_v16, %v2132_v41  ;;  %vm385_vm0 = vcmp.eq.s32.totalorder %v2066_v17, %v2075_v20  ;;  %vm441_vm1 = vcmp.eq.s32.totalorder %v2066_v17, %v2081_v22  ;;  %858 = vst [vmem:[%s2200_s9 + $0x18] sm:$0xff] %v810_v46 }
  0x7c   : > { %v755_v56 = vadd.f32 %v739_v34, %v699_v52  ;;  %v588_v57 = vadd.f32 %v572_v50, %v532_v53  ;;  %v796_v58 = vsel %vm776_vm15, %v2135_v42, 0.0  ;;  %v405_v59 = vsel %vm385_vm0, %v2078_v21, 0.0 }
  0x7d   : > { %v461_v60 = vsel %vm441_vm1, %v2084_v23, 0.0  ;;  %vm497_vm2 = vcmp.eq.s32.totalorder %v2066_v17, %v2087_v24  ;;  %vm553_vm3 = vcmp.eq.s32.totalorder %v2066_v17, %v2093_v26  ;;  %vm609_vm4 = vcmp.eq.s32.totalorder %v2066_v17, %v2103_v28 }
  0x7e   : > { %v811_v61 = vadd.f32 %v795_v43, %v755_v56  ;;  %v644_v62 = vadd.f32 %v628_v51, %v588_v57  ;;  %v477_v63 = vadd.f32 %v461_v60, %v405_v59  ;;  %v517_v0 = vsel %vm497_vm2, %v2090_v25, 0.0 }
  0x7f   : > { %v573_v14 = vsel %vm553_vm3, %v2096_v27, 0.0  ;;  %v629_v15 = vsel %vm609_vm4, %v2106_v29, 0.0  ;;  %vm665_vm5 = vcmp.eq.s32.totalorder %v2066_v17, %v2120_v36  ;;  %vm721_vm6 = vcmp.eq.s32.totalorder %v2066_v17, %v2126_v38 }
  0x80   : > { %v700_v30 = vadd.f32 %v684_v54, %v644_v62  ;;  %v533_v31 = vadd.f32 %v517_v0, %v477_v63  ;;  %v685_v32 = vsel %vm665_vm5, %v2123_v37, 0.0  ;;  %v741_v33 = vsel %vm721_vm6, %v2129_v40, 0.0  ;;  %859 = vst [vmem:[%s2200_s9 + $0x20] sm:$0xff] %v811_v61 }
  0x81   : > { %vm777_vm7 = vcmp.eq.s32.totalorder %v2066_v17, %v2132_v41  ;;  %vm386_vm8 = vcmp.eq.s32.totalorder %v2069_v18, %v2075_v20  ;;  %vm442_vm9 = vcmp.eq.s32.totalorder %v2069_v18, %v2081_v22  ;;  %vm498_vm10 = vcmp.eq.s32.totalorder %v2069_v18, %v2087_v24 }
  0x82   : > { %v756_v34 = vadd.f32 %v740_v55, %v700_v30  ;;  %v589_v35 = vadd.f32 %v573_v14, %v533_v31  ;;  %v797_v39 = vsel %vm777_vm7, %v2135_v42, 0.0  ;;  %v406_v43 = vsel %vm386_vm8, %v2078_v21, 0.0 }
  0x83   : > { %v462_v44 = vsel %vm442_vm9, %v2084_v23, 0.0  ;;  %vm554_vm11 = vcmp.eq.s32.totalorder %v2069_v18, %v2093_v26  ;;  %vm610_vm12 = vcmp.eq.s32.totalorder %v2069_v18, %v2103_v28  ;;  %v518_v48 = vsel %vm498_vm10, %v2090_v25, 0.0 }
  0x84   : > { %v812_v45 = vadd.f32 %v796_v58, %v756_v34  ;;  %v645_v46 = vadd.f32 %v629_v15, %v589_v35  ;;  %v478_v47 = vadd.f32 %v462_v44, %v406_v43  ;;  %v574_v49 = vsel %vm554_vm11, %v2096_v27, 0.0 }
  0x85   : > { %v630_v50 = vsel %vm610_vm12, %v2106_v29, 0.0  ;;  %vm666_vm13 = vcmp.eq.s32.totalorder %v2069_v18, %v2120_v36  ;;  %vm722_vm14 = vcmp.eq.s32.totalorder %v2069_v18, %v2126_v38  ;;  %vm778_vm15 = vcmp.eq.s32.totalorder %v2069_v18, %v2132_v41 }
  0x86   : > { %v701_v51 = vadd.f32 %v685_v32, %v645_v46  ;;  %v534_v52 = vadd.f32 %v518_v48, %v478_v47  ;;  %v686_v53 = vsel %vm666_vm13, %v2123_v37, 0.0  ;;  %v742_v54 = vsel %vm722_vm14, %v2129_v40, 0.0  ;;  %860 = vst [vmem:[%s2200_s9 + $0x28] sm:$0xff] %v812_v45 }
  0x87   : > { %vm387_vm0 = vcmp.eq.s32.totalorder %v2072_v19, %v2075_v20  ;;  %vm443_vm1 = vcmp.eq.s32.totalorder %v2072_v19, %v2081_v22  ;;  %v798_v57 = vsel %vm778_vm15, %v2135_v42, 0.0  ;;  %vm499_vm2 = vcmp.eq.s32.totalorder %v2072_v19, %v2087_v24 }
  0x88   : > { %v757_v55 = vadd.f32 %v741_v33, %v701_v51  ;;  %v590_v56 = vadd.f32 %v574_v49, %v534_v52  ;;  %v407_v58 = vsel %vm387_vm0, %v2078_v21, 0.0  ;;  %v463_v59 = vsel %vm443_vm1, %v2084_v23, 0.0 }
  0x89   : > { %vm555_vm3 = vcmp.eq.s32.totalorder %v2072_v19, %v2093_v26  ;;  %vm611_vm4 = vcmp.eq.s32.totalorder %v2072_v19, %v2103_v28  ;;  %v479_v62 = vadd.f32 %v463_v59, %v407_v58  ;;  %v519_v63 = vsel %vm499_vm2, %v2090_v25, 0.0 }
  0x8a   : > { %v813_v60 = vadd.f32 %v797_v39, %v757_v55  ;;  %v646_v61 = vadd.f32 %v630_v50, %v590_v56  ;;  %v575_v0 = vsel %vm555_vm3, %v2096_v27, 0.0  ;;  %v631_v14 = vsel %vm611_vm4, %v2106_v29, 0.0 }
  0x8b   : > { %vm667_vm5 = vcmp.eq.s32.totalorder %v2072_v19, %v2120_v36  ;;  %vm723_vm6 = vcmp.eq.s32.totalorder %v2072_v19, %v2126_v38  ;;  %v535_v30 = vadd.f32 %v519_v63, %v479_v62  ;;  %vm779_vm7 = vcmp.eq.s32.totalorder %v2072_v19, %v2132_v41 }
  0x8c   : > { %v702_v15 = vadd.f32 %v686_v53, %v646_v61  ;;  %v687_v31 = vsel %vm667_vm5, %v2123_v37, 0.0  ;;  %v743_v32 = vsel %vm723_vm6, %v2129_v40, 0.0  ;;  %v2349_v33 = vadd.s32 72, %v2023_v1  ;;  %861 = vst [vmem:[%s2200_s9 + $0x30] sm:$0xff] %v813_v60 }
  0x8d   : > { %v2352_v34 = vadd.s32 80, %v2023_v1  ;;  %v591_v39 = vadd.f32 %v575_v0, %v535_v30  ;;  %v799_v43 = vsel %vm779_vm7, %v2135_v42, 0.0  ;;  %v2357_v44 = vadd.s32 88, %v2023_v1 }
  0x8e   : > { %v758_v35 = vadd.f32 %v742_v54, %v702_v15  ;;  %vm388_vm8 = vcmp.eq.s32.totalorder %v2349_v33, %v2075_v20  ;;  %vm444_vm9 = vcmp.eq.s32.totalorder %v2349_v33, %v2081_v22  ;;  %vm500_vm10 = vcmp.eq.s32.totalorder %v2349_v33, %v2087_v24 }
  0x8f   : > { %vm556_vm11 = vcmp.eq.s32.totalorder %v2349_v33, %v2093_v26  ;;  %v647_v46 = vadd.f32 %v631_v14, %v591_v39  ;;  %v408_v47 = vsel %vm388_vm8, %v2078_v21, 0.0  ;;  %v464_v48 = vsel %vm444_vm9, %v2084_v23, 0.0 }
  0x90   : > { %v814_v45 = vadd.f32 %v798_v57, %v758_v35  ;;  %v480_v49 = vadd.f32 %v464_v48, %v408_v47  ;;  %v520_v50 = vsel %vm500_vm10, %v2090_v25, 0.0  ;;  %v576_v51 = vsel %vm556_vm11, %v2096_v27, 0.0 }
  0x91   : > { %vm612_vm12 = vcmp.eq.s32.totalorder %v2349_v33, %v2103_v28  ;;  %v703_v52 = vadd.f32 %v687_v31, %v647_v46  ;;  %vm668_vm13 = vcmp.eq.s32.totalorder %v2349_v33, %v2120_v36  ;;  %vm724_vm14 = vcmp.eq.s32.totalorder %v2349_v33, %v2126_v38 }
  0x92   : > { %v632_v53 = vsel %vm612_vm12, %v2106_v29, 0.0  ;;  %v536_v54 = vadd.f32 %v520_v50, %v480_v49  ;;  %v688_v55 = vsel %vm668_vm13, %v2123_v37, 0.0  ;;  %vm780_vm15 = vcmp.eq.s32.totalorder %v2349_v33, %v2132_v41  ;;  %862 = vst [vmem:[%s2200_s9 + $0x38] sm:$0xff] %v814_v45 }
  0x93   : > { %v759_v56 = vadd.f32 %v743_v32, %v703_v52  ;;  %v744_v57 = vsel %vm724_vm14, %v2129_v40, 0.0  ;;  %v800_v58 = vsel %vm780_vm15, %v2135_v42, 0.0  ;;  %vm389_vm0 = vcmp.eq.s32.totalorder %v2352_v34, %v2075_v20 }
  0x94   : > { %v592_v59 = vadd.f32 %v576_v51, %v536_v54  ;;  %v409_v60 = vsel %vm389_vm0, %v2078_v21, 0.0  ;;  %vm445_vm1 = vcmp.eq.s32.totalorder %v2352_v34, %v2081_v22  ;;  %vm501_vm2 = vcmp.eq.s32.totalorder %v2352_v34, %v2087_v24 }
  0x95   : > { %v815_v61 = vadd.f32 %v799_v43, %v759_v56  ;;  %v465_v62 = vsel %vm445_vm1, %v2084_v23, 0.0  ;;  %v521_v63 = vsel %vm501_vm2, %v2090_v25, 0.0  ;;  %vm557_vm3 = vcmp.eq.s32.totalorder %v2352_v34, %v2093_v26 }
  0x96   : > { %v648_v0 = vadd.f32 %v632_v53, %v592_v59  ;;  %v481_v14 = vadd.f32 %v465_v62, %v409_v60  ;;  %v577_v15 = vsel %vm557_vm3, %v2096_v27, 0.0  ;;  %vm613_vm4 = vcmp.eq.s32.totalorder %v2352_v34, %v2103_v28 }
  0x97   : > { %v633_v30 = vsel %vm613_vm4, %v2106_v29, 0.0  ;;  %vm669_vm5 = vcmp.eq.s32.totalorder %v2352_v34, %v2120_v36  ;;  %vm725_vm6 = vcmp.eq.s32.totalorder %v2352_v34, %v2126_v38  ;;  %863 = vst [vmem:[%s2200_s9 + $0x40] sm:$0xff] %v815_v61  ;;  %vm781_vm7 = vcmp.eq.s32.totalorder %v2352_v34, %v2132_v41 }
  0x98   : > { %v704_v31 = vadd.f32 %v688_v55, %v648_v0  ;;  %v537_v32 = vadd.f32 %v521_v63, %v481_v14  ;;  %v689_v35 = vsel %vm669_vm5, %v2123_v37, 0.0  ;;  %v745_v39 = vsel %vm725_vm6, %v2129_v40, 0.0 }
  0x99   : > { %vm390_vm8 = vcmp.eq.s32.totalorder %v2357_v44, %v2075_v20  ;;  %vm446_vm9 = vcmp.eq.s32.totalorder %v2357_v44, %v2081_v22  ;;  %vm502_vm10 = vcmp.eq.s32.totalorder %v2357_v44, %v2087_v24  ;;  %v801_v46 = vsel %vm781_vm7, %v2135_v42, 0.0 }
  0x9a   : > { %v760_v43 = vadd.f32 %v744_v57, %v704_v31  ;;  %v593_v45 = vadd.f32 %v577_v15, %v537_v32  ;;  %v410_v47 = vsel %vm390_vm8, %v2078_v21, 0.0  ;;  %v466_v48 = vsel %vm446_vm9, %v2084_v23, 0.0 }
  0x9b   : > { %v522_v49 = vsel %vm502_vm10, %v2090_v25, 0.0  ;;  %vm558_vm11 = vcmp.eq.s32.totalorder %v2357_v44, %v2093_v26  ;;  %vm614_vm12 = vcmp.eq.s32.totalorder %v2357_v44, %v2103_v28  ;;  %v482_v52 = vadd.f32 %v466_v48, %v410_v47 }
  0x9c   : > { %v816_v50 = vadd.f32 %v800_v58, %v760_v43  ;;  %v649_v51 = vadd.f32 %v633_v30, %v593_v45  ;;  %v578_v53 = vsel %vm558_vm11, %v2096_v27, 0.0  ;;  %v634_v54 = vsel %vm614_vm12, %v2106_v29, 0.0 }
  0x9d   : > { %vm670_vm13 = vcmp.eq.s32.totalorder %v2357_v44, %v2120_v36  ;;  %vm726_vm14 = vcmp.eq.s32.totalorder %v2357_v44, %v2126_v38  ;;  %vm782_vm15 = vcmp.eq.s32.totalorder %v2357_v44, %v2132_v41  ;;  %v538_v56 = vadd.f32 %v522_v49, %v482_v52 }
  0x9e   : > { %v705_v55 = vadd.f32 %v689_v35, %v649_v51  ;;  %v690_v57 = vsel %vm670_vm13, %v2123_v37, 0.0  ;;  %v746_v58 = vsel %vm726_vm14, %v2129_v40, 0.0  ;;  %v802_v59 = vsel %vm782_vm15, %v2135_v42, 0.0  ;;  %864 = vst [vmem:[%s2200_s9 + $0x48] sm:$0xff] %v816_v50 }
  0x9f   : > { %v2434_v60 = vadd.s32 96, %v2023_v1  ;;  %v2437_v61 = vadd.s32 104, %v2023_v1  ;;  %v594_v63 = vadd.f32 %v578_v53, %v538_v56  ;;  %v2441_v0 = vadd.s32 112, %v2023_v1 }
  0xa0   : > { %v761_v62 = vadd.f32 %v745_v39, %v705_v55  ;;  %v2444_v14 = vadd.s32 120, %v2023_v1 }
  0xa1   : > { %vm391_vm0 = vcmp.eq.s32.totalorder %v2434_v60, %v2075_v20  ;;  %vm447_vm1 = vcmp.eq.s32.totalorder %v2434_v60, %v2081_v22  ;;  %vm503_vm2 = vcmp.eq.s32.totalorder %v2434_v60, %v2087_v24  ;;  %vm559_vm3 = vcmp.eq.s32.totalorder %v2434_v60, %v2093_v26 }
  0xa2   : > { %v817_v15 = vadd.f32 %v801_v46, %v761_v62  ;;  %v650_v30 = vadd.f32 %v634_v54, %v594_v63  ;;  %v411_v31 = vsel %vm391_vm0, %v2078_v21, 0.0  ;;  %v467_v32 = vsel %vm447_vm1, %v2084_v23, 0.0 }
  0xa3   : > { %v483_v35 = vadd.f32 %v467_v32, %v411_v31  ;;  %v523_v39 = vsel %vm503_vm2, %v2090_v25, 0.0  ;;  %v579_v43 = vsel %vm559_vm3, %v2096_v27, 0.0  ;;  %vm615_vm4 = vcmp.eq.s32.totalorder %v2434_v60, %v2103_v28 }
  0xa4   : > { %v706_v45 = vadd.f32 %v690_v57, %v650_v30  ;;  %v635_v47 = vsel %vm615_vm4, %v2106_v29, 0.0  ;;  %vm671_vm5 = vcmp.eq.s32.totalorder %v2434_v60, %v2120_v36  ;;  %vm727_vm6 = vcmp.eq.s32.totalorder %v2434_v60, %v2126_v38  ;;  %865 = vst [vmem:[%s2200_s9 + $0x50] sm:$0xff] %v817_v15 }
  0xa5   : > { %v539_v46 = vadd.f32 %v523_v39, %v483_v35  ;;  %v691_v48 = vsel %vm671_vm5, %v2123_v37, 0.0  ;;  %vm783_vm7 = vcmp.eq.s32.totalorder %v2434_v60, %v2132_v41  ;;  %v747_v50 = vsel %vm727_vm6, %v2129_v40, 0.0 }
  0xa6   : > { %v762_v49 = vadd.f32 %v746_v58, %v706_v45  ;;  %v803_v51 = vsel %vm783_vm7, %v2135_v42, 0.0  ;;  %vm392_vm8 = vcmp.eq.s32.totalorder %v2437_v61, %v2075_v20  ;;  %vm448_vm9 = vcmp.eq.s32.totalorder %v2437_v61, %v2081_v22 }
  0xa7   : > { %v595_v52 = vadd.f32 %v579_v43, %v539_v46  ;;  %v412_v53 = vsel %vm392_vm8, %v2078_v21, 0.0  ;;  %vm504_vm10 = vcmp.eq.s32.totalorder %v2437_v61, %v2087_v24  ;;  %v468_v55 = vsel %vm448_vm9, %v2084_v23, 0.0 }
  0xa8   : > { %v818_v54 = vadd.f32 %v802_v59, %v762_v49  ;;  %v524_v56 = vsel %vm504_vm10, %v2090_v25, 0.0  ;;  %vm560_vm11 = vcmp.eq.s32.totalorder %v2437_v61, %v2093_v26  ;;  %v484_v58 = vadd.f32 %v468_v55, %v412_v53 }
  0xa9   : > { %v651_v57 = vadd.f32 %v635_v47, %v595_v52  ;;  %v580_v62 = vsel %vm560_vm11, %v2096_v27, 0.0  ;;  %vm616_vm12 = vcmp.eq.s32.totalorder %v2437_v61, %v2103_v28  ;;  %vm672_vm13 = vcmp.eq.s32.totalorder %v2437_v61, %v2120_v36 }
  0xaa   : > { %v636_v63 = vsel %vm616_vm12, %v2106_v29, 0.0  ;;  %vm728_vm14 = vcmp.eq.s32.totalorder %v2437_v61, %v2126_v38  ;;  %v540_v15 = vadd.f32 %v524_v56, %v484_v58  ;;  %v692_v30 = vsel %vm672_vm13, %v2123_v37, 0.0  ;;  %866 = vst [vmem:[%s2200_s9 + $0x58] sm:$0xff] %v818_v54 }
  0xab   : > { %v707_v59 = vadd.f32 %v691_v48, %v651_v57  ;;  %v748_v31 = vsel %vm728_vm14, %v2129_v40, 0.0  ;;  %vm784_vm15 = vcmp.eq.s32.totalorder %v2437_v61, %v2132_v41  ;;  %vm393_vm0 = vcmp.eq.s32.totalorder %v2441_v0, %v2075_v20 }
  0xac   : > { %vm449_vm1 = vcmp.eq.s32.totalorder %v2441_v0, %v2081_v22  ;;  %vm505_vm2 = vcmp.eq.s32.totalorder %v2441_v0, %v2087_v24  ;;  %v596_v35 = vadd.f32 %v580_v62, %v540_v15  ;;  %v804_v39 = vsel %vm784_vm15, %v2135_v42, 0.0 }
  0xad   : > { %v763_v32 = vadd.f32 %v747_v50, %v707_v59  ;;  %v413_v43 = vsel %vm393_vm0, %v2078_v21, 0.0  ;;  %v469_v45 = vsel %vm449_vm1, %v2084_v23, 0.0  ;;  %v525_v47 = vsel %vm505_vm2, %v2090_v25, 0.0 }
  0xae   : > { %vm561_vm3 = vcmp.eq.s32.totalorder %v2441_v0, %v2093_v26  ;;  %vm617_vm4 = vcmp.eq.s32.totalorder %v2441_v0, %v2103_v28  ;;  %v652_v48 = vadd.f32 %v636_v63, %v596_v35  ;;  %v485_v49 = vadd.f32 %v469_v45, %v413_v43 }
  0xaf   : > { %v819_v46 = vadd.f32 %v803_v51, %v763_v32  ;;  %v581_v50 = vsel %vm561_vm3, %v2096_v27, 0.0  ;;  %v637_v52 = vsel %vm617_vm4, %v2106_v29, 0.0  ;;  %vm673_vm5 = vcmp.eq.s32.totalorder %v2441_v0, %v2120_v36 }
  0xb0   : > { %vm729_vm6 = vcmp.eq.s32.totalorder %v2441_v0, %v2126_v38  ;;  %vm785_vm7 = vcmp.eq.s32.totalorder %v2441_v0, %v2132_v41  ;;  %v708_v53 = vadd.f32 %v692_v30, %v652_v48  ;;  %v541_v54 = vadd.f32 %v525_v47, %v485_v49 }
  0xb1   : > { %v693_v55 = vsel %vm673_vm5, %v2123_v37, 0.0  ;;  %v749_v51 = vsel %vm729_vm6, %v2129_v40, 0.0  ;;  %v805_v56 = vsel %vm785_vm7, %v2135_v42, 0.0  ;;  %vm394_vm8 = vcmp.eq.s32.totalorder %v2444_v14, %v2075_v20  ;;  %867 = vst [vmem:[%s2200_s9 + $0x60] sm:$0xff] %v819_v46 }
  0xb2   : > { %vm450_vm9 = vcmp.eq.s32.totalorder %v2444_v14, %v2081_v22  ;;  %v764_v57 = vadd.f32 %v748_v31, %v708_v53  ;;  %v597_v58 = vadd.f32 %v581_v50, %v541_v54  ;;  %v414_v62 = vsel %vm394_vm8, %v2078_v21, 0.0  ;;  %v356_v31 = vld [vmem:[%s267_s22] sm:$0xff] }
  0xb3   : > { %v470_v63 = vsel %vm450_vm9, %v2084_v23, 0.0  ;;  %vm506_vm10 = vcmp.eq.s32.totalorder %v2444_v14, %v2087_v24  ;;  %vm562_vm11 = vcmp.eq.s32.totalorder %v2444_v14, %v2093_v26  ;;  %vm618_vm12 = vcmp.eq.s32.totalorder %v2444_v14, %v2103_v28 }
  0xb4   : > { %v486_v59 = vadd.f32 %v470_v63, %v414_v62  ;;  %v820_v20 = vadd.f32 %v804_v39, %v764_v57  ;;  %v653_v22 = vadd.f32 %v637_v52, %v597_v58  ;;  %v526_v15 = vsel %vm506_vm10, %v2090_v25, 0.0 }
  0xb5   : > { %v582_v30 = vsel %vm562_vm11, %v2096_v27, 0.0  ;;  %v638_v35 = vsel %vm618_vm12, %v2106_v29, 0.0  ;;  %vm674_vm13 = vcmp.eq.s32.totalorder %v2444_v14, %v2120_v36  ;;  %vm730_vm14 = vcmp.eq.s32.totalorder %v2444_v14, %v2126_v38 }
  0xb6   : > { %v542_v32 = vadd.f32 %v526_v15, %v486_v59  ;;  %v709_v24 = vadd.f32 %v693_v55, %v653_v22  ;;  %v694_v26 = vsel %vm674_vm13, %v2123_v37, 0.0  ;;  %v750_v28 = vsel %vm730_vm14, %v2129_v40, 0.0  ;;  %868 = vst [vmem:[%s2200_s9 + $0x68] sm:$0xff] %v820_v20 }
  0xb7   : > { %vm786_vm15 = vcmp.eq.s32.totalorder %v2444_v14, %v2132_v41  ;;  %v2547_v43 = vrot.slane %v356_v31, %v2026_v2  ;;  %v2550_v45 = vrot.slane %v356_v31, %v2029_v3  ;;  %v2555_v38 = vrot.slane %v356_v31, %v2032_v4 }
  0xb8   : > { %v598_v39 = vadd.f32 %v582_v30, %v542_v32  ;;  %v765_v36 = vadd.f32 %v749_v51, %v709_v24  ;;  %v806_v47 = vsel %vm786_vm15, %v2135_v42, 0.0  ;;  %v2558_v46 = vrot.slane %v356_v31, %v2035_v5 }
  0xb9   : > { %vm875_vm0 = vcmp.eq.s32.totalorder %v2023_v1, %v2547_v43  ;;  %vm927_vm1 = vcmp.eq.s32.totalorder %v2023_v1, %v2550_v45  ;;  %v2565_v2 = vrot.slane %v356_v31, %v2038_v6  ;;  %vm979_vm2 = vcmp.eq.s32.totalorder %v2023_v1, %v2555_v38 }
  0xba   : > { %v654_v48 = vadd.f32 %v638_v35, %v598_v39  ;;  %v821_v3 = vadd.f32 %v805_v56, %v765_v36  ;;  %v891_v41 = vsel %vm875_vm0, %v2078_v21, 0.0  ;;  %v943_v4 = vsel %vm927_vm1, %v2084_v23, 0.0 }
  0xbb   : > { %v959_v49 = vadd.f32 %v943_v4, %v891_v41  ;;  %v995_v50 = vsel %vm979_vm2, %v2090_v25, 0.0  ;;  %vm1031_vm3 = vcmp.eq.s32.totalorder %v2023_v1, %v2558_v46  ;;  %vm1083_vm4 = vcmp.eq.s32.totalorder %v2023_v1, %v2565_v2 }
  0xbc   : > { %v710_v5 = vadd.f32 %v694_v26, %v654_v48  ;;  %v1047_v6 = vsel %vm1031_vm3, %v2096_v27, 0.0  ;;  %v2578_v52 = vrot.slane %v356_v31, %v2041_v7  ;;  %v1099_v55 = vsel %vm1083_vm4, %v2106_v29, 0.0  ;;  %869 = vst [vmem:[%s2200_s9 + $0x70] sm:$0xff] %v821_v3 }
  0xbd   : > { %v1011_v54 = vadd.f32 %v995_v50, %v959_v49  ;;  %v2582_v51 = vrot.slane %v356_v31, %v2044_v8  ;;  %v2590_v56 = vrot.slane %v356_v31, %v2047_v9  ;;  %vm876_vm6 = vcmp.eq.s32.totalorder %v2050_v10, %v2547_v43 }
  0xbe   : > { %v766_v53 = vadd.f32 %v750_v28, %v710_v5  ;;  %vm1135_vm5 = vcmp.eq.s32.totalorder %v2023_v1, %v2578_v52  ;;  %vm928_vm7 = vcmp.eq.s32.totalorder %v2050_v10, %v2550_v45  ;;  %v892_v9 = vsel %vm876_vm6, %v2078_v21, 0.0 }
  0xbf   : > { %v1063_v57 = vadd.f32 %v1047_v6, %v1011_v54  ;;  %vm1187_vm8 = vcmp.eq.s32.totalorder %v2023_v1, %v2582_v51  ;;  %v1151_v8 = vsel %vm1135_vm5, %v2123_v37, 0.0  ;;  %vm1239_vm9 = vcmp.eq.s32.totalorder %v2023_v1, %v2590_v56 }
  0xc0   : > { %v822_v7 = vadd.f32 %v806_v47, %v766_v53  ;;  %v944_v58 = vsel %vm928_vm7, %v2084_v23, 0.0  ;;  %v1203_v63 = vsel %vm1187_vm8, %v2129_v40, 0.0  ;;  %vm980_vm10 = vcmp.eq.s32.totalorder %v2050_v10, %v2555_v38 }
  0xc1   : > { %v1115_v62 = vadd.f32 %v1099_v55, %v1063_v57  ;;  %v960_v59 = vadd.f32 %v944_v58, %v892_v9  ;;  %vm1032_vm11 = vcmp.eq.s32.totalorder %v2050_v10, %v2558_v46  ;;  %vm1084_vm12 = vcmp.eq.s32.totalorder %v2050_v10, %v2565_v2 }
  0xc2   : > { %vm1136_vm13 = vcmp.eq.s32.totalorder %v2050_v10, %v2578_v52  ;;  %870 = vst [vmem:[%s2200_s9 + $0x78] sm:$0xff] %v822_v7  ;;  %v1255_v20 = vsel %vm1239_vm9, %v2135_v42, 0.0  ;;  %v996_v22 = vsel %vm980_vm10, %v2090_v25, 0.0  ;;  %v1048_v15 = vsel %vm1032_vm11, %v2096_v27, 0.0 }
  0xc3   : > { %v1167_v1 = vadd.f32 %v1151_v8, %v1115_v62  ;;  %v1012_v30 = vadd.f32 %v996_v22, %v960_v59  ;;  %v1100_v31 = vsel %vm1084_vm12, %v2106_v29, 0.0  ;;  %v1152_v32 = vsel %vm1136_vm13, %v2123_v37, 0.0 }
  0xc4   : > { %vm1188_vm14 = vcmp.eq.s32.totalorder %v2050_v10, %v2582_v51 }
  0xc5   : > { %1732 = shalt.err (!%p1729_p12)
}
  0xc6   : > { %s1733_s26 = scalar_lea.hbm %s2608_s13, 2048  ;;  %s1737_s1 = scalar_lea.hbm %s3087_s3, 4096 }
  0xc7   : > { %p1734_p1 = scmp.ne.s32.totalorder %s2608_s13, %s1733_s26  ;;  %p1738_p6 = scmp.lt.s32.totalorder %s2608_s13, %s3087_s3 }
  0xc8   : > { %p1739_p7 = scmp.lt.s32.totalorder %s1737_s1, %s1733_s26 }
  0xc9   : > { %p1735_p2 = pnand %p1734_p1, %p1922_p9 }
  0xca   : > { %p1740_p8 = por %p1739_p7, %p1738_p6 }
  0xcb   : > { %p1736_p5 = pneg %p1735_p2 }
  0xcd   : > { %p1741_p0 = pnand %p1740_p8, %p1736_p5 }
  0xcf   : > { %1744 = shalt.err (!%p1741_p0)
}
  0xd0   : > { %s1839_s21 = smov 128   ;;  %s1840_s9 = smov 8   ;;  %v1219_v35 = vadd.f32 %v1203_v63, %v1167_v1  ;;  %v1204_v24 = vsel %vm1188_vm14, %v2129_v40, 0.0  ;;  %vm1240_vm15 = vcmp.eq.s32.totalorder %v2050_v10, %v2590_v56  ;;  %vm877_vm0 = vcmp.eq.s32.totalorder %v2053_v11, %v2547_v43 }
  0xd1   : > { %1561 = dma.vmem_to_hbm [thread:$0]  (%p1922_p9), %s2610_s11, 2048, %s2608_s13, %s1336_s25, %s1839_s21, %s1839_s21, %s1840_s9   ;;  %v1064_v26 = vadd.f32 %v1048_v15, %v1012_v30  ;;  %v893_v28 = vsel %vm877_vm0, %v2078_v21, 0.0  ;;  %vm929_vm1 = vcmp.eq.s32.totalorder %v2053_v11, %v2550_v45  ;;  %vm981_vm2 = vcmp.eq.s32.totalorder %v2053_v11, %v2555_v38 }
  0xd2   : > { %v1271_v39 = vadd.f32 %v1255_v20, %v1219_v35  ;;  %v945_v36 = vsel %vm929_vm1, %v2084_v23, 0.0  ;;  %v997_v47 = vsel %vm981_vm2, %v2090_v25, 0.0  ;;  %vm1033_vm3 = vcmp.eq.s32.totalorder %v2053_v11, %v2558_v46  ;;  %s2684_s11 = scalar_lea.vmem [#allocation9], %s1543_s27  ;;  %s3032_s13 = scalar_lea.hbm %s3088_s4, %s1553_s14 }
  0xd3   : > { %v1116_v10 = vadd.f32 %v1100_v31, %v1064_v26  ;;  %v1256_v48 = vsel %vm1240_vm15, %v2135_v42, 0.0  ;;  %v961_v3 = vadd.f32 %v945_v36, %v893_v28  ;;  %vm1085_vm4 = vcmp.eq.s32.totalorder %v2053_v11, %v2565_v2  ;;  %s1370_s27 = sshll.u32 %s2684_s11, 4  ;;  %s1341_s25 = scalar_lea.sflag [#allocation10], %s2006_s24  ;;  %s3034_s27 = int_to_ptr.vmem [resolvable:$true] %s1370_s27 }
  0xd4   : > { %v1049_v41 = vsel %vm1033_vm3, %v2096_v27, 0.0  ;;  %vm1137_vm5 = vcmp.eq.s32.totalorder %v2053_v11, %v2578_v52  ;;  %vm1189_vm6 = vcmp.eq.s32.totalorder %v2053_v11, %v2582_v51  ;;  %v1101_v49 = vsel %vm1085_vm4, %v2106_v29, 0.0  ;;  %1319 = vst [vmem:[%s2684_s11] sm:$0xff] %v1271_v39  ;;  %s1745_s29 = scalar_lea.vmem %s3034_s27, 2048  ;;  %s1841_s10 = smov [#allocation9]  }
  0xd5   : > { %v1168_v4 = vadd.f32 %v1152_v32, %v1116_v10  ;;  %v1013_v5 = vadd.f32 %v997_v47, %v961_v3  ;;  %v1153_v50 = vsel %vm1137_vm5, %v2123_v37, 0.0  ;;  %vm1241_vm7 = vcmp.eq.s32.totalorder %v2053_v11, %v2590_v56  ;;  %p1746_p3 = scmp.ne.s32.totalorder %s3034_s27, %s1745_s29  ;;  %s1749_s19 = sshll.u32 %s1841_s10, 4  ;;  %s1750_s19 = int_to_ptr.vmem [resolvable:$false] %s1749_s19 }
  0xd6   : > { %vm878_vm8 = vcmp.eq.s32.totalorder %v2056_v12, %v2547_v43  ;;  %vm930_vm9 = vcmp.eq.s32.totalorder %v2056_v12, %v2550_v45  ;;  %vm982_vm10 = vcmp.eq.s32.totalorder %v2056_v12, %v2555_v38  ;;  %v1205_v54 = vsel %vm1189_vm6, %v2129_v40, 0.0  ;;  %s1751_s18 = scalar_lea.vmem %s1750_s19, 4096  ;;  %p1752_p13 = scmp.lt.s32.totalorder %s3034_s27, %s1750_s19 }
  0xd7   : > { %v1220_v6 = vadd.f32 %v1204_v24, %v1168_v4  ;;  %v1065_v53 = vadd.f32 %v1049_v41, %v1013_v5  ;;  %v894_v55 = vsel %vm878_vm8, %v2078_v21, 0.0  ;;  %v946_v7 = vsel %vm930_vm9, %v2084_v23, 0.0  ;;  %p1747_p4 = pnand %p1746_p3, %p1922_p9  ;;  %p1753_p12 = scmp.lt.s32.totalorder %s1751_s18, %s1745_s29 }
  0xd8   : > { %v998_v57 = vsel %vm982_vm10, %v2090_v25, 0.0  ;;  %vm1034_vm11 = vcmp.eq.s32.totalorder %v2056_v12, %v2558_v46  ;;  %vm1086_vm12 = vcmp.eq.s32.totalorder %v2056_v12, %v2565_v2  ;;  %v1257_v9 = vsel %vm1241_vm7, %v2135_v42, 0.0 }
  0xd9   : > { %v1272_v11 = vadd.f32 %v1256_v48, %v1220_v6  ;;  %v1117_v8 = vadd.f32 %v1101_v49, %v1065_v53  ;;  %v962_v58 = vadd.f32 %v946_v7, %v894_v55  ;;  %v1050_v62 = vsel %vm1034_vm11, %v2096_v27, 0.0  ;;  %p1748_p10 = pneg %p1747_p4  ;;  %p1754_p1 = por %p1753_p12, %p1752_p13 }
  0xda   : > { %v1102_v63 = vsel %vm1086_vm12, %v2106_v29, 0.0  ;;  %vm1138_vm13 = vcmp.eq.s32.totalorder %v2056_v12, %v2578_v52  ;;  %vm1190_vm14 = vcmp.eq.s32.totalorder %v2056_v12, %v2582_v51  ;;  %vm1242_vm15 = vcmp.eq.s32.totalorder %v2056_v12, %v2590_v56 }
  0xdb   : > { %v1169_v59 = vadd.f32 %v1153_v50, %v1117_v8  ;;  %v1014_v1 = vadd.f32 %v998_v57, %v962_v58  ;;  %v1154_v20 = vsel %vm1138_vm13, %v2123_v37, 0.0  ;;  %v1206_v22 = vsel %vm1190_vm14, %v2129_v40, 0.0  ;;  %1320 = vst [vmem:[%s2684_s11 + $0x8] sm:$0xff] %v1272_v11  ;;  %p1755_p2 = pnand %p1754_p1, %p1748_p10 }
  0xdc   : > { %vm879_vm0 = vcmp.eq.s32.totalorder %v2059_v13, %v2547_v43  ;;  %vm931_vm1 = vcmp.eq.s32.totalorder %v2059_v13, %v2550_v45  ;;  %vm983_vm2 = vcmp.eq.s32.totalorder %v2059_v13, %v2555_v38  ;;  %vm1035_vm3 = vcmp.eq.s32.totalorder %v2059_v13, %v2558_v46 }
  0xdd   : > { %v1221_v15 = vadd.f32 %v1205_v54, %v1169_v59  ;;  %v1066_v30 = vadd.f32 %v1050_v62, %v1014_v1  ;;  %v895_v31 = vsel %vm879_vm0, %v2078_v21, 0.0  ;;  %v947_v32 = vsel %vm931_vm1, %v2084_v23, 0.0 }
  0xde   : > { %v963_v35 = vadd.f32 %v947_v32, %v895_v31  ;;  %vm1087_vm4 = vcmp.eq.s32.totalorder %v2059_v13, %v2565_v2  ;;  %v999_v28 = vsel %vm983_vm2, %v2090_v25, 0.0  ;;  %v1051_v39 = vsel %vm1035_vm3, %v2096_v27, 0.0 }
  0xdf   : > { %v1273_v24 = vadd.f32 %v1257_v9, %v1221_v15  ;;  %v1118_v26 = vadd.f32 %v1102_v63, %v1066_v30  ;;  %v1258_v36 = vsel %vm1242_vm15, %v2135_v42, 0.0  ;;  %vm1139_vm5 = vcmp.eq.s32.totalorder %v2059_v13, %v2578_v52 }
  0xe0   : > { %v1015_v47 = vadd.f32 %v999_v28, %v963_v35  ;;  %vm1191_vm6 = vcmp.eq.s32.totalorder %v2059_v13, %v2582_v51  ;;  %v1103_v48 = vsel %vm1087_vm4, %v2106_v29, 0.0  ;;  %v1155_v3 = vsel %vm1139_vm5, %v2123_v37, 0.0 }
  0xe1   : > { %v1170_v10 = vadd.f32 %v1154_v20, %v1118_v26  ;;  %v1207_v4 = vsel %vm1191_vm6, %v2129_v40, 0.0  ;;  %vm880_vm7 = vcmp.eq.s32.totalorder %v2063_v16, %v2547_v43  ;;  %vm932_vm8 = vcmp.eq.s32.totalorder %v2063_v16, %v2550_v45  ;;  %1321 = vst [vmem:[%s2684_s11 + $0x10] sm:$0xff] %v1273_v24 }
  0xe2   : > { %v1067_v41 = vadd.f32 %v1051_v39, %v1015_v47  ;;  %vm1243_vm9 = vcmp.eq.s32.totalorder %v2059_v13, %v2590_v56  ;;  %v896_v5 = vsel %vm880_vm7, %v2078_v21, 0.0  ;;  %v948_v49 = vsel %vm932_vm8, %v2084_v23, 0.0 }
  0xe3   : > { %v1222_v12 = vadd.f32 %v1206_v22, %v1170_v10  ;;  %v964_v6 = vadd.f32 %v948_v49, %v896_v5  ;;  %vm984_vm10 = vcmp.eq.s32.totalorder %v2063_v16, %v2555_v38  ;;  %vm1036_vm11 = vcmp.eq.s32.totalorder %v2063_v16, %v2558_v46 }
  0xe4   : > { %v1119_v50 = vadd.f32 %v1103_v48, %v1067_v41  ;;  %v1000_v54 = vsel %vm984_vm10, %v2090_v25, 0.0  ;;  %v1052_v55 = vsel %vm1036_vm11, %v2096_v27, 0.0  ;;  %vm1088_vm12 = vcmp.eq.s32.totalorder %v2063_v16, %v2565_v2 }
  0xe5   : > { %v1274_v53 = vadd.f32 %v1258_v36, %v1222_v12  ;;  %v1259_v7 = vsel %vm1243_vm9, %v2135_v42, 0.0  ;;  %v1016_v57 = vadd.f32 %v1000_v54, %v964_v6  ;;  %vm1140_vm13 = vcmp.eq.s32.totalorder %v2063_v16, %v2578_v52 }
  0xe6   : > { %v1171_v13 = vadd.f32 %v1155_v3, %v1119_v50  ;;  %v1104_v11 = vsel %vm1088_vm12, %v2106_v29, 0.0  ;;  %v1156_v8 = vsel %vm1140_vm13, %v2123_v37, 0.0  ;;  %vm1192_vm14 = vcmp.eq.s32.totalorder %v2063_v16, %v2582_v51 }
  0xe7   : > { %v1068_v58 = vadd.f32 %v1052_v55, %v1016_v57  ;;  %v1208_v62 = vsel %vm1192_vm14, %v2129_v40, 0.0  ;;  %vm1244_vm15 = vcmp.eq.s32.totalorder %v2063_v16, %v2590_v56  ;;  %1322 = vst [vmem:[%s2684_s11 + $0x18] sm:$0xff] %v1274_v53  ;;  %vm881_vm0 = vcmp.eq.s32.totalorder %v2066_v17, %v2547_v43 }
  0xe8   : > { %v1223_v9 = vadd.f32 %v1207_v4, %v1171_v13  ;;  %vm933_vm1 = vcmp.eq.s32.totalorder %v2066_v17, %v2550_v45  ;;  %vm985_vm2 = vcmp.eq.s32.totalorder %v2066_v17, %v2555_v38  ;;  %vm1037_vm3 = vcmp.eq.s32.totalorder %v2066_v17, %v2558_v46 }
  0xe9   : > { %v1120_v59 = vadd.f32 %v1104_v11, %v1068_v58  ;;  %v897_v1 = vsel %vm881_vm0, %v2078_v21, 0.0  ;;  %v949_v16 = vsel %vm933_vm1, %v2084_v23, 0.0  ;;  %v1260_v20 = vsel %vm1244_vm15, %v2135_v42, 0.0 }
  0xea   : > { %v1275_v63 = vadd.f32 %v1259_v7, %v1223_v9  ;;  %v965_v22 = vadd.f32 %v949_v16, %v897_v1  ;;  %v1001_v15 = vsel %vm985_vm2, %v2090_v25, 0.0  ;;  %vm1089_vm4 = vcmp.eq.s32.totalorder %v2066_v17, %v2565_v2 }
  0xeb   : > { %v1172_v30 = vadd.f32 %v1156_v8, %v1120_v59  ;;  %v1053_v31 = vsel %vm1037_vm3, %v2096_v27, 0.0  ;;  %vm1141_vm5 = vcmp.eq.s32.totalorder %v2066_v17, %v2578_v52  ;;  %v1105_v35 = vsel %vm1089_vm4, %v2106_v29, 0.0 }
  0xec   : > { %v1017_v32 = vadd.f32 %v1001_v15, %v965_v22  ;;  %v1157_v24 = vsel %vm1141_vm5, %v2123_v37, 0.0  ;;  %vm1193_vm6 = vcmp.eq.s32.totalorder %v2066_v17, %v2582_v51  ;;  %1323 = vst [vmem:[%s2684_s11 + $0x20] sm:$0xff] %v1275_v63  ;;  %vm1245_vm7 = vcmp.eq.s32.totalorder %v2066_v17, %v2590_v56 }
  0xed   : > { %v1224_v26 = vadd.f32 %v1208_v62, %v1172_v30  ;;  %v1209_v28 = vsel %vm1193_vm6, %v2129_v40, 0.0  ;;  %vm882_vm8 = vcmp.eq.s32.totalorder %v2069_v18, %v2547_v43  ;;  %vm934_vm9 = vcmp.eq.s32.totalorder %v2069_v18, %v2550_v45 }
  0xee   : > { %v1069_v39 = vadd.f32 %v1053_v31, %v1017_v32  ;;  %v898_v36 = vsel %vm882_vm8, %v2078_v21, 0.0  ;;  %vm986_vm10 = vcmp.eq.s32.totalorder %v2069_v18, %v2555_v38  ;;  %v950_v10 = vsel %vm934_vm9, %v2084_v23, 0.0 }
  0xef   : > { %v1276_v47 = vadd.f32 %v1260_v20, %v1224_v26  ;;  %v1002_v48 = vsel %vm986_vm10, %v2090_v25, 0.0  ;;  %vm1038_vm11 = vcmp.eq.s32.totalorder %v2069_v18, %v2558_v46  ;;  %v1261_v3 = vsel %vm1245_vm7, %v2135_v42, 0.0 }
  0xf0   : > { %v1121_v17 = vadd.f32 %v1105_v35, %v1069_v39  ;;  %v966_v41 = vadd.f32 %v950_v10, %v898_v36  ;;  %vm1090_vm12 = vcmp.eq.s32.totalorder %v2069_v18, %v2565_v2  ;;  %v1054_v4 = vsel %vm1038_vm11, %v2096_v27, 0.0 }
  0xf1   : > { %vm1142_vm13 = vcmp.eq.s32.totalorder %v2069_v18, %v2578_v52  ;;  %vm1194_vm14 = vcmp.eq.s32.totalorder %v2069_v18, %v2582_v51  ;;  %v1106_v49 = vsel %vm1090_vm12, %v2106_v29, 0.0  ;;  %1324 = vst [vmem:[%s2684_s11 + $0x28] sm:$0xff] %v1276_v47  ;;  %vm1246_vm15 = vcmp.eq.s32.totalorder %v2069_v18, %v2590_v56 }
  0xf2   : > { %v1173_v12 = vadd.f32 %v1157_v24, %v1121_v17  ;;  %v1018_v5 = vadd.f32 %v1002_v48, %v966_v41  ;;  %v1158_v50 = vsel %vm1142_vm13, %v2123_v37, 0.0  ;;  %vm883_vm0 = vcmp.eq.s32.totalorder %v2072_v19, %v2547_v43 }
  0xf3   : > { %vm935_vm1 = vcmp.eq.s32.totalorder %v2072_v19, %v2550_v45  ;;  %vm987_vm2 = vcmp.eq.s32.totalorder %v2072_v19, %v2555_v38  ;;  %v1210_v54 = vsel %vm1194_vm14, %v2129_v40, 0.0  ;;  %v899_v55 = vsel %vm883_vm0, %v2078_v21, 0.0 }
  0xf4   : > { %v1225_v6 = vadd.f32 %v1209_v28, %v1173_v12  ;;  %v1070_v53 = vadd.f32 %v1054_v4, %v1018_v5  ;;  %v951_v13 = vsel %vm935_vm1, %v2084_v23, 0.0  ;;  %v1003_v7 = vsel %vm987_vm2, %v2090_v25, 0.0 }
  0xf5   : > { %vm1039_vm3 = vcmp.eq.s32.totalorder %v2072_v19, %v2558_v46  ;;  %vm1091_vm4 = vcmp.eq.s32.totalorder %v2072_v19, %v2565_v2  ;;  %v1262_v11 = vsel %vm1246_vm15, %v2135_v42, 0.0  ;;  %v967_v8 = vadd.f32 %v951_v13, %v899_v55 }
  0xf6   : > { %v1277_v18 = vadd.f32 %v1261_v3, %v1225_v6  ;;  %v1122_v57 = vadd.f32 %v1106_v49, %v1070_v53  ;;  %v1055_v9 = vsel %vm1039_vm3, %v2096_v27, 0.0  ;;  %v1107_v58 = vsel %vm1091_vm4, %v2106_v29, 0.0 }
  0xf7   : > { %vm1143_vm5 = vcmp.eq.s32.totalorder %v2072_v19, %v2578_v52  ;;  %vm1195_vm6 = vcmp.eq.s32.totalorder %v2072_v19, %v2582_v51  ;;  %v1019_v63 = vadd.f32 %v1003_v7, %v967_v8  ;;  %vm1247_vm7 = vcmp.eq.s32.totalorder %v2072_v19, %v2590_v56 }
  0xf8   : > { %v1174_v62 = vadd.f32 %v1158_v50, %v1122_v57  ;;  %v1159_v59 = vsel %vm1143_vm5, %v2123_v37, 0.0  ;;  %v1211_v1 = vsel %vm1195_vm6, %v2129_v40, 0.0  ;;  %vm884_vm8 = vcmp.eq.s32.totalorder %v2349_v33, %v2547_v43  ;;  %1325 = vst [vmem:[%s2684_s11 + $0x30] sm:$0xff] %v1277_v18 }
  0xf9   : > { %vm936_vm9 = vcmp.eq.s32.totalorder %v2349_v33, %v2550_v45  ;;  %v1071_v20 = vadd.f32 %v1055_v9, %v1019_v63  ;;  %v900_v22 = vsel %vm884_vm8, %v2078_v21, 0.0  ;;  %vm988_vm10 = vcmp.eq.s32.totalorder %v2349_v33, %v2555_v38 }
  0xfa   : > { %v1226_v16 = vadd.f32 %v1210_v54, %v1174_v62  ;;  %v952_v15 = vsel %vm936_vm9, %v2084_v23, 0.0  ;;  %vm1040_vm11 = vcmp.eq.s32.totalorder %v2349_v33, %v2558_v46  ;;  %vm1092_vm12 = vcmp.eq.s32.totalorder %v2349_v33, %v2565_v2 }
  0xfb   : > { %v968_v30 = vadd.f32 %v952_v15, %v900_v22  ;;  %v1123_v32 = vadd.f32 %v1107_v58, %v1071_v20  ;;  %v1004_v35 = vsel %vm988_vm10, %v2090_v25, 0.0  ;;  %v1056_v24 = vsel %vm1040_vm11, %v2096_v27, 0.0 }
  0xfc   : > { %v1278_v31 = vadd.f32 %v1262_v11, %v1226_v16  ;;  %v1263_v26 = vsel %vm1247_vm7, %v2135_v42, 0.0  ;;  %vm1144_vm13 = vcmp.eq.s32.totalorder %v2349_v33, %v2578_v52  ;;  %vm1196_vm14 = vcmp.eq.s32.totalorder %v2349_v33, %v2582_v51 }
  0xfd   : > { %v1020_v28 = vadd.f32 %v1004_v35, %v968_v30  ;;  %v1175_v39 = vadd.f32 %v1159_v59, %v1123_v32  ;;  %v1108_v36 = vsel %vm1092_vm12, %v2106_v29, 0.0  ;;  %v1160_v47 = vsel %vm1144_vm13, %v2123_v37, 0.0 }
  0xfe   : > { %v1212_v48 = vsel %vm1196_vm14, %v2129_v40, 0.0  ;;  %vm885_vm15 = vcmp.eq.s32.totalorder %v2352_v34, %v2547_v43  ;;  %vm937_vm0 = vcmp.eq.s32.totalorder %v2352_v34, %v2550_v45  ;;  %1326 = vst [vmem:[%s2684_s11 + $0x38] sm:$0xff] %v1278_v31  ;;  %vm1248_vm1 = vcmp.eq.s32.totalorder %v2349_v33, %v2590_v56 }
  0xff   : > { %v1072_v10 = vadd.f32 %v1056_v24, %v1020_v28  ;;  %v1227_v19 = vadd.f32 %v1211_v1, %v1175_v39  ;;  %v901_v17 = vsel %vm885_vm15, %v2078_v21, 0.0  ;;  %v953_v3 = vsel %vm937_vm0, %v2084_v23, 0.0 }
 0x100   : > { %v969_v4 = vadd.f32 %v953_v3, %v901_v17  ;;  %vm989_vm2 = vcmp.eq.s32.totalorder %v2352_v34, %v2555_v38  ;;  %vm1041_vm3 = vcmp.eq.s32.totalorder %v2352_v34, %v2558_v46  ;;  %vm1093_vm4 = vcmp.eq.s32.totalorder %v2352_v34, %v2565_v2 }
 0x101   : > { %v1124_v41 = vadd.f32 %v1108_v36, %v1072_v10  ;;  %v1279_v12 = vadd.f32 %v1263_v26, %v1227_v19  ;;  %v1005_v5 = vsel %vm989_vm2, %v2090_v25, 0.0  ;;  %v1057_v49 = vsel %vm1041_vm3, %v2096_v27, 0.0 }
 0x102   : > { %v1264_v50 = vsel %vm1248_vm1, %v2135_v42, 0.0  ;;  %v1021_v6 = vadd.f32 %v1005_v5, %v969_v4  ;;  %vm1145_vm5 = vcmp.eq.s32.totalorder %v2352_v34, %v2578_v52  ;;  %v1109_v53 = vsel %vm1093_vm4, %v2106_v29, 0.0 }
 0x103   : > { %v1176_v33 = vadd.f32 %v1160_v47, %v1124_v41  ;;  %v1161_v54 = vsel %vm1145_vm5, %v2123_v37, 0.0  ;;  %vm1197_vm6 = vcmp.eq.s32.totalorder %v2352_v34, %v2582_v51  ;;  %vm1249_vm7 = vcmp.eq.s32.totalorder %v2352_v34, %v2590_v56  ;;  %1327 = vst [vmem:[%s2684_s11 + $0x40] sm:$0xff] %v1279_v12 }
 0x104   : > { %v1073_v13 = vadd.f32 %v1057_v49, %v1021_v6  ;;  %v1213_v7 = vsel %vm1197_vm6, %v2129_v40, 0.0  ;;  %vm886_vm8 = vcmp.eq.s32.totalorder %v2357_v44, %v2547_v43  ;;  %vm938_vm9 = vcmp.eq.s32.totalorder %v2357_v44, %v2550_v45 }
 0x105   : > { %v1228_v55 = vadd.f32 %v1212_v48, %v1176_v33  ;;  %vm990_vm10 = vcmp.eq.s32.totalorder %v2357_v44, %v2555_v38  ;;  %vm1042_vm11 = vcmp.eq.s32.totalorder %v2357_v44, %v2558_v46  ;;  %v902_v11 = vsel %vm886_vm8, %v2078_v21, 0.0 }
 0x106   : > { %v1125_v57 = vadd.f32 %v1109_v53, %v1073_v13  ;;  %v954_v34 = vsel %vm938_vm9, %v2084_v23, 0.0  ;;  %v1265_v8 = vsel %vm1249_vm7, %v2135_v42, 0.0  ;;  %v1006_v58 = vsel %vm990_vm10, %v2090_v25, 0.0 }
 0x107   : > { %v1280_v18 = vadd.f32 %v1264_v50, %v1228_v55  ;;  %v970_v9 = vadd.f32 %v954_v34, %v902_v11  ;;  %vm1094_vm12 = vcmp.eq.s32.totalorder %v2357_v44, %v2565_v2  ;;  %v1058_v63 = vsel %vm1042_vm11, %v2096_v27, 0.0 }
 0x108   : > { %v1177_v62 = vadd.f32 %v1161_v54, %v1125_v57  ;;  %vm1146_vm13 = vcmp.eq.s32.totalorder %v2357_v44, %v2578_v52  ;;  %v1110_v1 = vsel %vm1094_vm12, %v2106_v29, 0.0  ;;  %vm1198_vm14 = vcmp.eq.s32.totalorder %v2357_v44, %v2582_v51 }
 0x109   : > { %v1022_v59 = vadd.f32 %v1006_v58, %v970_v9  ;;  %v1162_v16 = vsel %vm1146_vm13, %v2123_v37, 0.0  ;;  %1328 = vst [vmem:[%s2684_s11 + $0x48] sm:$0xff] %v1280_v18  ;;  %v1214_v22 = vsel %vm1198_vm14, %v2129_v40, 0.0  ;;  %vm1250_vm15 = vcmp.eq.s32.totalorder %v2357_v44, %v2590_v56 }
 0x10a   : > { %v1229_v20 = vadd.f32 %v1213_v7, %v1177_v62  ;;  %vm887_vm0 = vcmp.eq.s32.totalorder %v2434_v60, %v2547_v43  ;;  %vm939_vm1 = vcmp.eq.s32.totalorder %v2434_v60, %v2550_v45  ;;  %vm991_vm2 = vcmp.eq.s32.totalorder %v2434_v60, %v2555_v38 }
 0x10b   : > { %v1074_v15 = vadd.f32 %v1058_v63, %v1022_v59  ;;  %v903_v30 = vsel %vm887_vm0, %v2078_v21, 0.0  ;;  %v955_v32 = vsel %vm939_vm1, %v2084_v23, 0.0  ;;  %v1007_v35 = vsel %vm991_vm2, %v2090_v25, 0.0 }
 0x10c   : > { %v1281_v31 = vadd.f32 %v1265_v8, %v1229_v20  ;;  %vm1043_vm3 = vcmp.eq.s32.totalorder %v2434_v60, %v2558_v46  ;;  %v1266_v24 = vsel %vm1250_vm15, %v2135_v42, 0.0  ;;  %v971_v26 = vadd.f32 %v955_v32, %v903_v30 }
 0x10d   : > { %v1126_v44 = vadd.f32 %v1110_v1, %v1074_v15  ;;  %vm1095_vm4 = vcmp.eq.s32.totalorder %v2434_v60, %v2565_v2  ;;  %v1059_v28 = vsel %vm1043_vm3, %v2096_v27, 0.0  ;;  %vm1147_vm5 = vcmp.eq.s32.totalorder %v2434_v60, %v2578_v52 }
 0x10e   : > { %vm1199_vm6 = vcmp.eq.s32.totalorder %v2434_v60, %v2582_v51  ;;  %v1023_v36 = vadd.f32 %v1007_v35, %v971_v26  ;;  %v1111_v47 = vsel %vm1095_vm4, %v2106_v29, 0.0  ;;  %v1163_v10 = vsel %vm1147_vm5, %v2123_v37, 0.0  ;;  %1329 = vst [vmem:[%s2684_s11 + $0x50] sm:$0xff] %v1281_v31 }
 0x10f   : > { %v1178_v39 = vadd.f32 %v1162_v16, %v1126_v44  ;;  %vm1251_vm7 = vcmp.eq.s32.totalorder %v2434_v60, %v2590_v56  ;;  %vm888_vm8 = vcmp.eq.s32.totalorder %v2437_v61, %v2547_v43  ;;  %vm940_vm9 = vcmp.eq.s32.totalorder %v2437_v61, %v2550_v45 }
 0x110   : > { %vm992_vm10 = vcmp.eq.s32.totalorder %v2437_v61, %v2555_v38  ;;  %v1075_v19 = vadd.f32 %v1059_v28, %v1023_v36  ;;  %v1215_v17 = vsel %vm1199_vm6, %v2129_v40, 0.0  ;;  %v904_v3 = vsel %vm888_vm8, %v2078_v21, 0.0 }
 0x111   : > { %v1230_v48 = vadd.f32 %v1214_v22, %v1178_v39  ;;  %v956_v41 = vsel %vm940_vm9, %v2084_v23, 0.0  ;;  %v1008_v4 = vsel %vm992_vm10, %v2090_v25, 0.0  ;;  %vm1044_vm11 = vcmp.eq.s32.totalorder %v2437_v61, %v2558_v46 }
 0x112   : > { %vm1096_vm12 = vcmp.eq.s32.totalorder %v2437_v61, %v2565_v2  ;;  %v1127_v12 = vadd.f32 %v1111_v47, %v1075_v19  ;;  %v1267_v5 = vsel %vm1251_vm7, %v2135_v42, 0.0  ;;  %v972_v49 = vadd.f32 %v956_v41, %v904_v3 }
 0x113   : > { %v1282_v60 = vadd.f32 %v1266_v24, %v1230_v48  ;;  %v1060_v33 = vsel %vm1044_vm11, %v2096_v27, 0.0  ;;  %v1112_v50 = vsel %vm1096_vm12, %v2106_v29, 0.0  ;;  %vm1148_vm13 = vcmp.eq.s32.totalorder %v2437_v61, %v2578_v52 }
 0x114   : > { %vm1200_vm14 = vcmp.eq.s32.totalorder %v2437_v61, %v2582_v51  ;;  %v1179_v6 = vadd.f32 %v1163_v10, %v1127_v12  ;;  %v1024_v53 = vadd.f32 %v1008_v4, %v972_v49  ;;  %vm1252_vm15 = vcmp.eq.s32.totalorder %v2437_v61, %v2590_v56 }
 0x115   : > { %v1164_v54 = vsel %vm1148_vm13, %v2123_v37, 0.0  ;;  %v1216_v55 = vsel %vm1200_vm14, %v2129_v40, 0.0  ;;  %vm889_vm0 = vcmp.eq.s32.totalorder %v2441_v0, %v2547_v43  ;;  %vm941_vm1 = vcmp.eq.s32.totalorder %v2441_v0, %v2550_v45  ;;  %1330 = vst [vmem:[%s2684_s11 + $0x58] sm:$0xff] %v1282_v60 }
 0x116   : > { %v1231_v13 = vadd.f32 %v1215_v17, %v1179_v6  ;;  %v1076_v7 = vadd.f32 %v1060_v33, %v1024_v53  ;;  %v905_v18 = vsel %vm889_vm0, %v2078_v21, 0.0  ;;  %v957_v57 = vsel %vm941_vm1, %v2084_v23, 0.0 }
 0x117   : > { %v973_v11 = vadd.f32 %v957_v57, %v905_v18  ;;  %vm993_vm2 = vcmp.eq.s32.totalorder %v2441_v0, %v2555_v38  ;;  %vm1045_vm3 = vcmp.eq.s32.totalorder %v2441_v0, %v2558_v46  ;;  %vm1097_vm4 = vcmp.eq.s32.totalorder %v2441_v0, %v2565_v2 }
 0x118   : > { %v1283_v34 = vadd.f32 %v1267_v5, %v1231_v13  ;;  %v1128_v8 = vadd.f32 %v1112_v50, %v1076_v7  ;;  %v1009_v9 = vsel %vm993_vm2, %v2090_v25, 0.0  ;;  %v1061_v58 = vsel %vm1045_vm3, %v2096_v27, 0.0 }
 0x119   : > { %v1268_v62 = vsel %vm1252_vm15, %v2135_v42, 0.0  ;;  %v1025_v63 = vadd.f32 %v1009_v9, %v973_v11  ;;  %vm1149_vm5 = vcmp.eq.s32.totalorder %v2441_v0, %v2578_v52  ;;  %vm1201_vm6 = vcmp.eq.s32.totalorder %v2441_v0, %v2582_v51 }
 0x11a   : > { %v1180_v59 = vadd.f32 %v1164_v54, %v1128_v8  ;;  %v1113_v1 = vsel %vm1097_vm4, %v2106_v29, 0.0  ;;  %v1165_v16 = vsel %vm1149_vm5, %v2123_v37, 0.0  ;;  %v1217_v22 = vsel %vm1201_vm6, %v2129_v40, 0.0  ;;  %1331 = vst [vmem:[%s2684_s11 + $0x60] sm:$0xff] %v1283_v34 }
 0x11b   : > { %v1077_v20 = vadd.f32 %v1061_v58, %v1025_v63  ;;  %vm890_vm7 = vcmp.eq.s32.totalorder %v2444_v14, %v2547_v43  ;;  %vm942_vm8 = vcmp.eq.s32.totalorder %v2444_v14, %v2550_v45  ;;  %vm1253_vm9 = vcmp.eq.s32.totalorder %v2441_v0, %v2590_v56 }
 0x11c   : > { %v1232_v61 = vadd.f32 %v1216_v55, %v1180_v59  ;;  %v906_v15 = vsel %vm890_vm7, %v2078_v21, 0.0  ;;  %v958_v30 = vsel %vm942_vm8, %v2084_v23, 0.0  ;;  %vm994_vm10 = vcmp.eq.s32.totalorder %v2444_v14, %v2555_v38 }
 0x11d   : > { %v1129_v31 = vadd.f32 %v1113_v1, %v1077_v20  ;;  %v974_v32 = vadd.f32 %v958_v30, %v906_v15  ;;  %vm1046_vm11 = vcmp.eq.s32.totalorder %v2444_v14, %v2558_v46  ;;  %v1010_v45 = vsel %vm994_vm10, %v2090_v25, 0.0 }
 0x11e   : > { %v1284_v43 = vadd.f32 %v1268_v62, %v1232_v61  ;;  %v1062_v35 = vsel %vm1046_vm11, %v2096_v27, 0.0  ;;  %vm1098_vm12 = vcmp.eq.s32.totalorder %v2444_v14, %v2565_v2  ;;  %vm1150_vm13 = vcmp.eq.s32.totalorder %v2444_v14, %v2578_v52 }
 0x11f   : > { %v1181_v21 = vadd.f32 %v1165_v16, %v1129_v31  ;;  %v1026_v23 = vadd.f32 %v1010_v45, %v974_v32  ;;  %v1269_v0 = vsel %vm1253_vm9, %v2135_v42, 0.0  ;;  %v1114_v38 = vsel %vm1098_vm12, %v2106_v29, 0.0 }
 0x120   : > { %vm1202_vm14 = vcmp.eq.s32.totalorder %v2444_v14, %v2582_v51  ;;  %1332 = vst [vmem:[%s2684_s11 + $0x68] sm:$0xff] %v1284_v43  ;;  %v1166_v25 = vsel %vm1150_vm13, %v2123_v37, 0.0  ;;  %vm1254_vm15 = vcmp.eq.s32.totalorder %v2444_v14, %v2590_v56 }
 0x121   : > { %v1233_v46 = vadd.f32 %v1217_v22, %v1181_v21  ;;  %v1078_v44 = vadd.f32 %v1062_v35, %v1026_v23  ;;  %v1218_v52 = vsel %vm1202_vm14, %v2129_v40, 0.0  ;;  %v1270_v24 = vsel %vm1254_vm15, %v2135_v42, 0.0 }
 0x123   : > { %v1285_v27 = vadd.f32 %v1269_v0, %v1233_v46  ;;  %v1130_v2 = vadd.f32 %v1114_v38, %v1078_v44 }
 0x125   : > { %v1182_v29 = vadd.f32 %v1166_v25, %v1130_v2  ;;  %1333 = vst [vmem:[%s2684_s11 + $0x70] sm:$0xff] %v1285_v27 }
 0x127   : > { %v1234_v26 = vadd.f32 %v1218_v52, %v1182_v29 }
 0x129   : > { %v1286_v28 = vadd.f32 %v1270_v24, %v1234_v26 }
 0x12b   : > { %1334 = vst [vmem:[%s2684_s11 + $0x78] sm:$0xff] %v1286_v28 }
 0x12c   : > { %1758 = shalt.err (!%p1755_p2)
}
 0x12d   : > { %s1759_s14 = scalar_lea.hbm %s3032_s13, 2048  ;;  %s1763_s26 = scalar_lea.hbm %s3088_s4, 4096 }
 0x12e   : > { %p1760_p5 = scmp.ne.s32.totalorder %s3032_s13, %s1759_s14  ;;  %p1764_p8 = scmp.lt.s32.totalorder %s3032_s13, %s3088_s4 }
 0x12f   : > { %p1765_p0 = scmp.lt.s32.totalorder %s1763_s26, %s1759_s14 }
 0x130   : > { %p1761_p6 = pnand %p1760_p5, %p1922_p9 }
 0x131   : > { %p1766_p3 = por %p1765_p0, %p1764_p8 }
 0x132   : > { %p1762_p7 = pneg %p1761_p6 }
 0x134   : > { %p1767_p4 = pnand %p1766_p3, %p1762_p7 }
 0x136   : > { %1770 = shalt.err (!%p1767_p4)
}
 0x137   : > { %1562 = dma.vmem_to_hbm [thread:$0]  (%p1922_p9), %s3034_s27, 2048, %s3032_s13, %s1341_s25, %s1839_s21, %s1839_s21, %s1840_s9  }
 0x138 PF: > { %s1385_s1 = sand.u32 1, %s1813_s15   ;;  %p3104_p10 = scmp.ge.s32.totalorder %s1833_s20, 2 }
 0x139   : > { %s1386_s7 = scalar_lea.sflag [#allocation4], %s1385_s1 }
 0x13a   : > { %p1576_p13 = pnand %p3104_p10, %p1929_p11 }
 0x13c   : > { %p1577_p12 = pneg %p1576_p13 }
 0x13e   : > { %1804 = dma.done.wait (%p1577_p12), %s1386_s7, 2048  }
 0x13f   : > { %1806 = vsyncadd (%p1577_p12), %s1386_s7, 4294965248  ;;  %s1395_s22 = scalar_lea.sflag [#allocation10], %s1385_s1 }
 0x140   : > { %1808 = dma.done.wait (%p1577_p12), %s1395_s22, 2048  }
 0x141   : > { %1810 = vsyncadd (%p1577_p12), %s1395_s22, 4294965248  ;;  %s27_s20 = sadd.s32 1, %s1833_s20   ;;  %s3105_s28 = sld [smem:[#allocation17_spill]] }
 0x142   : > { %p24_p1 = scmp.ge.s32.totalorder %s27_s20, 4   ;;  %s3106_s18 = sld [smem:[#allocation15_spill]] }
 0x143   : > { %s3107_s19 = sld [smem:[#allocation16_spill]]  ;;  %s3108_s15 = smov %s1817_s16 }
 0x144   : > { %s3109_s16 = smov %s1821_s17  ;;  %26 = sbr.rel (!%p24_p1) target bundleno = 12 (0xc), region = 122 }
 0x147   : > { %s3110_s17 = smov %s3105_s28 }
 0x149   :  { %1400 = vsyncpa [#allocation3], 1 }
 0x14a   :  { %1402 = vsyncpa [#allocation3 + $0x1], 1 }
 0x14b   :  { %1403 = vsyncpa [#allocation6], 1 }
 0x14c   :  { %1405 = vsyncpa [#allocation6 + $0x1], 1 }
 0x14d   :  { %1406 = vsyncpa [#allocation4], 1 }
 0x14e   :  { %1408 = vsyncpa [#allocation4 + $0x1], 1 }
 0x14f   :  { %1409 = vsyncpa [#allocation10], 1 }
 0x150   :  { %1411 = vsyncpa [#allocation10 + $0x1], 1 }

</bundles_post_ra>
